<compile_context>
chip_gen: v6e
topology: v6e:2x2x1
jax: 0.10.0
libtpu: 0.0.40
codegen_flags: <defaults>
</compile_context>

<pallas_src>
import jax
import jax.numpy as jnp
import numpy as np
from jax import lax
from jax.experimental import pallas as pl
from jax.experimental.pallas import tpu as pltpu


def _make_lstm_kernel(num_layers, seq_len, hidden_size, batch_pad):
    H = hidden_size
    G = 4 * H                      # 128 lanes when H == 32
    B = batch_pad                  # sublane-padded batch (multiple of 8)
    unroll = True if seq_len <= 16 else 8   # bound unroll for longer sequences

    def kernel(*refs):
        # refs = [x, (w_ihT, w_hhT_pad, b) * L, w_fcT_pad, b_fc_pad, out,
        #         xproj_scratch, seq_scratch]
        x_ref = refs[0]
        idx = 1
        layer_w = []
        for _ in range(num_layers):
            layer_w.append((refs[idx], refs[idx + 1], refs[idx + 2]))
            idx += 3
        wfc_ref = refs[idx]
        bfc_ref = refs[idx + 1]
        out_ref = refs[idx + 2]
        xproj_ref = refs[idx + 3]          # VMEM (seq*B, 4H) f32: hoisted x @ W_ih + b
        seq_ref = refs[idx + 4]            # VMEM (seq*B, 4H) f32: layer output sequence

        # Lane mask for the "g" gate block (tanh) vs sigmoid lanes — hoisted once.
        lane = lax.broadcasted_iota(jnp.int32, (B, G), 1)
        is_g = (lane >= 2 * H) & (lane < 3 * H)
        # sigmoid(x) = 0.5*(1 + tanh(x/2)): pre-scale sigmoid lanes by 0.5, one tanh
        # over the full vreg, then a masked affine fixup (single EUP pass per step).
        pre = jnp.where(is_g, 1.0, 0.5).astype(jnp.float32)
        post_add = jnp.where(is_g, 0.0, 0.5).astype(jnp.float32)

        h_last = None
        for l, (wih_ref, whh_ref, b_ref) in enumerate(layer_w):
            last_layer = (l == num_layers - 1)

            # ---- hoisted input projection (+ folded bias): one big MXU matmul ----
            x_in = x_ref[...] if l == 0 else seq_ref[...].astype(jnp.bfloat16)
            xproj_ref[...] = (
                jnp.dot(x_in, wih_ref[...], preferred_element_type=jnp.float32)
                + b_ref[...]
            )

            whh = whh_ref[...]               # (4H, 4H) bf16, only rows [H:2H] are live

            def step(t, carry, whh=whh, last_layer=last_layer):
                c, h_bf = carry              # c: f32 (B,4H), block 1 live
                                             # h_bf: bf16 (B,4H), block 1 live
                row = pl.multiple_of(t * B, B)
                # TODO(synk): hold whh stationary in the MXU across the time loop via
                # pltpu.matmul_push_rhs / matmul_acc_lhs / matmul_pop so the 128x128
                # RHS is not re-staged every serial step (LHS is only 8 rows).
                gates = xproj_ref[pl.ds(row, B), :] + jnp.dot(
                    h_bf, whh, preferred_element_type=jnp.float32)   # (B,4H) = [i|f|g|o]
                t_act = jnp.tanh(gates * pre)          # single transcendental pass
                act = t_act * pre + post_add           # [sig(i)|sig(f)|tanh(g)|sig(o)]
                act2 = pltpu.roll(act, 2 * H, axis=1)  # blocks [g|o|i|f] (dir-symmetric)
                # prod = [i*g | f*o | i*g | f*o]  (2H-periodic)
                prod = act * act2
                # roll by H puts i*g into block 1 (prod is 2H-periodic -> direction
                # independent).  c_new block 1 = f*c + i*g.
                c_new = act * c + pltpu.roll(prod, H, axis=1)
                # h_new block 1 = o * tanh(c_new); reuses act2 (no third roll).
                h_new = jnp.tanh(c_new) * act2
                h_new_bf = h_new.astype(jnp.bfloat16)
                if not last_layer:
                    seq_ref[pl.ds(row, B), :] = h_new   # full-tile f32 store
                return c_new, h_new_bf

            c0 = jnp.zeros((B, G), jnp.float32)
            h0 = jnp.zeros((B, G), jnp.bfloat16)
            _, h_last = lax.fori_loop(0, seq_len, step, (c0, h0), unroll=unroll)

        # final Linear on h_n[-1] (h lives in block 1; other rows of wfc are zero)
        out = jnp.dot(h_last, wfc_ref[...], preferred_element_type=jnp.float32)
        out_ref[...] = out + bfc_ref[...]

    return kernel


def prepare_weights(lstm_params, fc_w, fc_b):
    """One-time weight preprocessing (transpose, block-row padding, bf16, bias fold).

    Returns (weight_arrays, num_layers, hidden_size, output_size).
    """
    num_layers = len(lstm_params)
    H = lstm_params[0][1].shape[1]                  # w_hh: (4H, H)
    G = 4 * H
    assert G == 128, "lane-block scheme assumes 4*hidden_size == 128 (one vreg wide)"
    O = fc_w.shape[0]
    O_pad = ((O + 127) // 128) * 128                # lane-dense output store

    def block1_rows(w_t):
        """(H, N) -> (4H, N) with live rows at [H:2H] (the lanes where h lives)."""
        return jnp.zeros((G, w_t.shape[1]), w_t.dtype).at[H:2 * H, :].set(w_t)

    arrays = []
    for l, (w_ih, w_hh, b_ih, b_hh) in enumerate(lstm_params):
        w_ih_t = jnp.transpose(w_ih).astype(jnp.float32)               # (in_l, 4H)
        if l > 0:                                 # layer input = previous h (block 1)
            w_ih_t = block1_rows(w_ih_t)                               # (4H, 4H)
        w_hh_t = block1_rows(jnp.transpose(w_hh).astype(jnp.float32))  # (4H, 4H)
        arrays.append(w_ih_t.astype(jnp.bfloat16))
        arrays.append(w_hh_t.astype(jnp.bfloat16))
        arrays.append((b_ih + b_hh).astype(jnp.float32)[None, :])      # (1, 4H)
    fc_t = jnp.zeros((G, O_pad), jnp.float32).at[H:2 * H, :O].set(
        jnp.transpose(fc_w).astype(jnp.float32))
    arrays.append(fc_t.astype(jnp.bfloat16))                           # (4H, O_pad)
    arrays.append(jnp.zeros((1, O_pad), jnp.float32).at[0, :O].set(
        fc_b.astype(jnp.float32)))                                     # (1, O_pad)
    arrays = [jax.device_put(a) for a in arrays]
    return arrays, num_layers, H, O


def custom_lstm_forward(x, weight_arrays, num_layers, hidden_size, output_size):
    """x: (batch, seq, input_size); weight_arrays from prepare_weights()."""
    batch, seq, in_size = x.shape
    H = hidden_size
    G = 4 * H
    O_pad = weight_arrays[-1].shape[1]
    B_pad = ((batch + 7) // 8) * 8                  # sublane granule

    # time-major, batch padded, flattened for the hoisted (seq*B, in) matmul
    x_tm = jnp.transpose(x, (1, 0, 2)).astype(jnp.float32)            # (seq, batch, in)
    x_tm = jnp.pad(x_tm, ((0, 0), (0, B_pad - batch), (0, 0)))
    x_flat = x_tm.reshape(seq * B_pad, in_size).astype(jnp.bfloat16)

    in_arrays = [x_flat] + list(weight_arrays)

    def full_spec(shape):
        nd = len(shape)
        return pl.BlockSpec(shape, lambda i, nd=nd: (0,) * nd)

    kernel = _make_lstm_kernel(num_layers, seq, H, B_pad)

    # TODO(synk): for scaled-up shapes on v7x, chunk the time axis (run the hoisted
    # input GEMM per T_c-step chunk) so the two scratches stay well under the 64 MiB
    # per-core VMEM ceiling, set vmem_limit_bytes explicitly, and add a "parallel"
    # batch grid axis so each TensorCore runs an independent batch shard.
    out = pl.pallas_call(
        kernel,
        out_shape=jax.ShapeDtypeStruct((B_pad, O_pad), jnp.float32),
        grid=(1,),
        in_specs=[full_spec(a.shape) for a in in_arrays],
        out_specs=full_spec((B_pad, O_pad)),
        scratch_shapes=[
            pltpu.VMEM((seq * B_pad, G), jnp.float32),    # hoisted x @ W_ih + b
            pltpu.VMEM((seq * B_pad, G), jnp.float32),    # per-layer output sequence
        ],
        compiler_params=pltpu.CompilerParams(dimension_semantics=("arbitrary",)),
    )(*in_arrays)
    return out[:batch, :output_size]


def reference_forward(x, lstm_params, fc_w, fc_b):
    """Pure-JAX f32 reference matching PyTorch nn.LSTM + nn.Linear semantics."""
    batch, seq, _ = x.shape
    H = lstm_params[0][1].shape[1]
    inp = x.astype(jnp.float32)
    h = None
    for (w_ih, w_hh, b_ih, b_hh) in lstm_params:
        h = jnp.zeros((batch, H), jnp.float32)
        c = jnp.zeros((batch, H), jnp.float32)
        outs = []
        for t in range(seq):
            x_t = inp[:, t, :]
            gates = x_t @ w_ih.T + b_ih + h @ w_hh.T + b_hh
            i_g = jax.nn.sigmoid(gates[:, 0 * H:1 * H])
            f_g = jax.nn.sigmoid(gates[:, 1 * H:2 * H])
            g_g = jnp.tanh(gates[:, 2 * H:3 * H])
            o_g = jax.nn.sigmoid(gates[:, 3 * H:4 * H])
            c = f_g * c + i_g * g_g
            h = o_g * jnp.tanh(c)
            outs.append(h)
        inp = jnp.stack(outs, axis=1)
    return h @ fc_w.T + fc_b


if __name__ == "__main__":
    input_size, hidden_size, num_layers, output_size = 16, 32, 2, 8
    batch, seq = 4, 8

    key = jax.random.PRNGKey(0)
    k_init = 1.0 / np.sqrt(hidden_size)
    keys = jax.random.split(key, 4 * num_layers + 3)

    ki = 0
    lstm_params = []
    for l in range(num_layers):
        in_l = input_size if l == 0 else hidden_size
        w_ih = jax.random.uniform(keys[ki], (4 * hidden_size, in_l), jnp.float32, -k_init, k_init); ki += 1
        w_hh = jax.random.uniform(keys[ki], (4 * hidden_size, hidden_size), jnp.float32, -k_init, k_init); ki += 1
        b_ih = jax.random.uniform(keys[ki], (4 * hidden_size,), jnp.float32, -k_init, k_init); ki += 1
        b_hh = jax.random.uniform(keys[ki], (4 * hidden_size,), jnp.float32, -k_init, k_init); ki += 1
        lstm_params.append((w_ih, w_hh, b_ih, b_hh))
    fc_w = jax.random.uniform(keys[ki], (output_size, hidden_size), jnp.float32, -k_init, k_init); ki += 1
    fc_b = jax.random.uniform(keys[ki], (output_size,), jnp.float32, -k_init, k_init); ki += 1
    x = jax.random.normal(jax.random.PRNGKey(1), (batch, seq, input_size), jnp.float32)

    # one-time weight preprocessing (hoisted out of the per-call path)
    weight_arrays, L, H, O = prepare_weights(lstm_params, fc_w, fc_b)

    out = jax.block_until_ready(custom_lstm_forward(x, weight_arrays, L, H, O))
    ref = reference_forward(x, lstm_params, fc_w, fc_b)
    # bf16 MXU operands with f32 accumulation -> slightly relaxed tolerance.
    np.testing.assert_allclose(np.asarray(out), np.asarray(ref), atol=2e-2, rtol=2e-2)
    print("KERNEL_OK")
</pallas_src>

<mosaic_0001>
module attributes {stable_mosaic.version = 11 : i64} {
  func.func @kernel(%arg0: i32, %arg1: memref<64x16xbf16, #tpu.memory_space<vmem>>, %arg2: memref<16x128xbf16, #tpu.memory_space<vmem>>, %arg3: memref<128x128xbf16, #tpu.memory_space<vmem>>, %arg4: memref<1x128xf32, #tpu.memory_space<vmem>>, %arg5: memref<128x128xbf16, #tpu.memory_space<vmem>>, %arg6: memref<128x128xbf16, #tpu.memory_space<vmem>>, %arg7: memref<1x128xf32, #tpu.memory_space<vmem>>, %arg8: memref<128x128xbf16, #tpu.memory_space<vmem>>, %arg9: memref<1x128xf32, #tpu.memory_space<vmem>>, %arg10: memref<8x128xf32, #tpu.memory_space<vmem>>, %arg11: memref<64x128xf32, #tpu.memory_space<vmem>>, %arg12: memref<64x128xf32, #tpu.memory_space<vmem>>) attributes {dimension_semantics = [#tpu.dimension_semantics<arbitrary>], iteration_bounds = array<i64: 1>, scalar_prefetch = 0 : i64, scratch_operands = 2 : i64, tpu.core_type = #tpu.core_type<tc>, window_params = [{pipeline_mode = #tpu.pipeline_mode<synchronous>, transform_indices = @transform_0, window_bounds = array<i64: 64, 16>}, {pipeline_mode = #tpu.pipeline_mode<synchronous>, transform_indices = @transform_1, window_bounds = array<i64: 16, 128>}, {pipeline_mode = #tpu.pipeline_mode<synchronous>, transform_indices = @transform_2, window_bounds = array<i64: 128, 128>}, {pipeline_mode = #tpu.pipeline_mode<synchronous>, transform_indices = @transform_3, window_bounds = array<i64: 1, 128>}, {pipeline_mode = #tpu.pipeline_mode<synchronous>, transform_indices = @transform_4, window_bounds = array<i64: 128, 128>}, {pipeline_mode = #tpu.pipeline_mode<synchronous>, transform_indices = @transform_5, window_bounds = array<i64: 128, 128>}, {pipeline_mode = #tpu.pipeline_mode<synchronous>, transform_indices = @transform_6, window_bounds = array<i64: 1, 128>}, {pipeline_mode = #tpu.pipeline_mode<synchronous>, transform_indices = @transform_7, window_bounds = array<i64: 128, 128>}, {pipeline_mode = #tpu.pipeline_mode<synchronous>, transform_indices = @transform_8, window_bounds = array<i64: 1, 128>}, {pipeline_mode = #tpu.pipeline_mode<synchronous>, transform_indices = @transform_9, window_bounds = array<i64: 8, 128>}]} {
    %0 = tpu.iota {dimensions = array<i32: 1>} : vector<8x128xi32>
    %c64_i32 = arith.constant 64 : i32
    %1 = vector.broadcast %c64_i32 : i32 to vector<8x128xi32>
    %2 = arith.cmpi sge, %0, %1 : vector<8x128xi32>
    %c96_i32 = arith.constant 96 : i32
    %3 = vector.broadcast %c96_i32 : i32 to vector<8x128xi32>
    %4 = arith.cmpi slt, %0, %3 : vector<8x128xi32>
    %5 = arith.andi %2, %4 : vector<8x128xi1>
    %cst = arith.constant 1.000000e+00 : f32
    %cst_0 = arith.constant 5.000000e-01 : f32
    %6 = vector.broadcast %cst : f32 to vector<8x128xf32>
    %7 = vector.broadcast %cst_0 : f32 to vector<8x128xf32>
    %8 = arith.select %5, %6, %7 : vector<8x128xi1>, vector<8x128xf32>
    %cst_1 = arith.constant 0.000000e+00 : f32
    %cst_2 = arith.constant 5.000000e-01 : f32
    %9 = vector.broadcast %cst_1 : f32 to vector<8x128xf32>
    %10 = vector.broadcast %cst_2 : f32 to vector<8x128xf32>
    %11 = arith.select %5, %9, %10 : vector<8x128xi1>, vector<8x128xf32>
    %c0 = arith.constant 0 : index
    %c0_3 = arith.constant 0 : index
    %12 = vector.load %arg1[%c0, %c0_3] : memref<64x16xbf16, #tpu.memory_space<vmem>>, vector<64x16xbf16>
    %c0_4 = arith.constant 0 : index
    %c0_5 = arith.constant 0 : index
    %13 = vector.load %arg2[%c0_4, %c0_5] : memref<16x128xbf16, #tpu.memory_space<vmem>>, vector<16x128xbf16>
    %cst_6 = arith.constant dense<0.000000e+00> : vector<64x128xf32>
    %14 = tpu.matmul %12, %13, %cst_6 {dimension_numbers = #tpu.dot_dimension_numbers<[1], [0], [0], [1], [0, 0, 1, 1], [], []>} : vector<64x16xbf16>, vector<16x128xbf16>, vector<64x128xf32> -> vector<64x128xf32>
    %c0_7 = arith.constant 0 : index
    %c0_8 = arith.constant 0 : index
    %15 = vector.load %arg4[%c0_7, %c0_8] : memref<1x128xf32, #tpu.memory_space<vmem>>, vector<1x128xf32>
    %16 = vector.broadcast %15 : vector<1x128xf32> to vector<64x128xf32>
    %17 = arith.addf %14, %16 : vector<64x128xf32>
    %c0_9 = arith.constant 0 : index
    %c0_10 = arith.constant 0 : index
    %18 = vector.load %arg11[%c0_9, %c0_10] : memref<64x128xf32, #tpu.memory_space<vmem>>, vector<64x128xf32>
    tpu.vector_store %arg11[%c0_9, %c0_10], %17 {strides = array<i32>} : memref<64x128xf32, #tpu.memory_space<vmem>>, vector<64x128xf32>,
    %c0_11 = arith.constant 0 : index
    %c0_12 = arith.constant 0 : index
    %19 = vector.load %arg3[%c0_11, %c0_12] : memref<128x128xbf16, #tpu.memory_space<vmem>>, vector<128x128xbf16>
    %cst_13 = arith.constant 0.000000e+00 : f32
    %20 = vector.broadcast %cst_13 : f32 to vector<8x128xf32>
    %cst_14 = arith.constant 0.000000e+00 : bf16
    %21 = vector.broadcast %cst_14 : bf16 to vector<8x128xbf16>
    %c0_i32 = arith.constant 0 : i32
    %c8_i32 = arith.constant 8 : i32
    %22 = arith.muli %c0_i32, %c8_i32 : i32
    %23 = tpu.assume_multiple %22, 8 : i32
    %24 = arith.index_cast %23 : i32 to index
    %c0_15 = arith.constant 0 : index
    %25 = vector.load %arg11[%24, %c0_15] : memref<64x128xf32, #tpu.memory_space<vmem>>, vector<8x128xf32>
    %cst_16 = arith.constant dense<0.000000e+00> : vector<8x128xf32>
    %26 = tpu.matmul %21, %19, %cst_16 {dimension_numbers = #tpu.dot_dimension_numbers<[1], [0], [0], [1], [0, 0, 1, 1], [], []>} : vector<8x128xbf16>, vector<128x128xbf16>, vector<8x128xf32> -> vector<8x128xf32>
    %27 = arith.addf %25, %26 : vector<8x128xf32>
    %28 = arith.mulf %27, %8 : vector<8x128xf32>
    %29 = math.tanh %28 : vector<8x128xf32>
    %30 = arith.mulf %29, %8 : vector<8x128xf32>
    %31 = arith.addf %30, %11 : vector<8x128xf32>
    %c64_i32_17 = arith.constant 64 : i32
    %32 = tpu.dynamic_rotate %31 by %c64_i32_17 dim 1 : vector<8x128xf32>, i32 -> vector<8x128xf32>
    %33 = arith.mulf %31, %32 : vector<8x128xf32>
    %34 = arith.mulf %31, %20 : vector<8x128xf32>
    %c32_i32 = arith.constant 32 : i32
    %35 = tpu.dynamic_rotate %33 by %c32_i32 dim 1 : vector<8x128xf32>, i32 -> vector<8x128xf32>
    %36 = arith.addf %34, %35 : vector<8x128xf32>
    %37 = math.tanh %36 : vector<8x128xf32>
    %38 = arith.mulf %37, %32 : vector<8x128xf32>
    %39 = arith.truncf %38 : vector<8x128xf32> to vector<8x128xbf16>
    %40 = arith.index_cast %23 : i32 to index
    %c0_18 = arith.constant 0 : index
    %41 = vector.load %arg12[%40, %c0_18] : memref<64x128xf32, #tpu.memory_space<vmem>>, vector<8x128xf32>
    tpu.vector_store %arg12[%40, %c0_18], %38 {strides = array<i32>} : memref<64x128xf32, #tpu.memory_space<vmem>>, vector<8x128xf32>,
    %c1_i32 = arith.constant 1 : i32
    %c8_i32_19 = arith.constant 8 : i32
    %42 = arith.muli %c1_i32, %c8_i32_19 : i32
    %43 = tpu.assume_multiple %42, 8 : i32
    %44 = arith.index_cast %43 : i32 to index
    %c0_20 = arith.constant 0 : index
    %45 = vector.load %arg11[%44, %c0_20] : memref<64x128xf32, #tpu.memory_space<vmem>>, vector<8x128xf32>
    %cst_21 = arith.constant dense<0.000000e+00> : vector<8x128xf32>
    %46 = tpu.matmul %39, %19, %cst_21 {dimension_numbers = #tpu.dot_dimension_numbers<[1], [0], [0], [1], [0, 0, 1, 1], [], []>} : vector<8x128xbf16>, vector<128x128xbf16>, vector<8x128xf32> -> vector<8x128xf32>
    %47 = arith.addf %45, %46 : vector<8x128xf32>
    %48 = arith.mulf %47, %8 : vector<8x128xf32>
    %49 = math.tanh %48 : vector<8x128xf32>
    %50 = arith.mulf %49, %8 : vector<8x128xf32>
    %51 = arith.addf %50, %11 : vector<8x128xf32>
    %c64_i32_22 = arith.constant 64 : i32
    %52 = tpu.dynamic_rotate %51 by %c64_i32_22 dim 1 : vector<8x128xf32>, i32 -> vector<8x128xf32>
    %53 = arith.mulf %51, %52 : vector<8x128xf32>
    %54 = arith.mulf %51, %36 : vector<8x128xf32>
    %c32_i32_23 = arith.constant 32 : i32
    %55 = tpu.dynamic_rotate %53 by %c32_i32_23 dim 1 : vector<8x128xf32>, i32 -> vector<8x128xf32>
    %56 = arith.addf %54, %55 : vector<8x128xf32>
    %57 = math.tanh %56 : vector<8x128xf32>
    %58 = arith.mulf %57, %52 : vector<8x128xf32>
    %59 = arith.truncf %58 : vector<8x128xf32> to vector<8x128xbf16>
    %60 = arith.index_cast %43 : i32 to index
    %c0_24 = arith.constant 0 : index
    %61 = vector.load %arg12[%60, %c0_24] : memref<64x128xf32, #tpu.memory_space<vmem>>, vector<8x128xf32>
    tpu.vector_store %arg12[%60, %c0_24], %58 {strides = array<i32>} : memref<64x128xf32, #tpu.memory_space<vmem>>, vector<8x128xf32>,
    %c2_i32 = arith.constant 2 : i32
    %c8_i32_25 = arith.constant 8 : i32
    %62 = arith.muli %c2_i32, %c8_i32_25 : i32
    %63 = tpu.assume_multiple %62, 8 : i32
    %64 = arith.index_cast %63 : i32 to index
    %c0_26 = arith.constant 0 : index
    %65 = vector.load %arg11[%64, %c0_26] : memref<64x128xf32, #tpu.memory_space<vmem>>, vector<8x128xf32>
    %cst_27 = arith.constant dense<0.000000e+00> : vector<8x128xf32>
    %66 = tpu.matmul %59, %19, %cst_27 {dimension_numbers = #tpu.dot_dimension_numbers<[1], [0], [0], [1], [0, 0, 1, 1], [], []>} : vector<8x128xbf16>, vector<128x128xbf16>, vector<8x128xf32> -> vector<8x128xf32>
    %67 = arith.addf %65, %66 : vector<8x128xf32>
    %68 = arith.mulf %67, %8 : vector<8x128xf32>
    %69 = math.tanh %68 : vector<8x128xf32>
    %70 = arith.mulf %69, %8 : vector<8x128xf32>
    %71 = arith.addf %70, %11 : vector<8x128xf32>
    %c64_i32_28 = arith.constant 64 : i32
    %72 = tpu.dynamic_rotate %71 by %c64_i32_28 dim 1 : vector<8x128xf32>, i32 -> vector<8x128xf32>
    %73 = arith.mulf %71, %72 : vector<8x128xf32>
    %74 = arith.mulf %71, %56 : vector<8x128xf32>
    %c32_i32_29 = arith.constant 32 : i32
    %75 = tpu.dynamic_rotate %73 by %c32_i32_29 dim 1 : vector<8x128xf32>, i32 -> vector<8x128xf32>
    %76 = arith.addf %74, %75 : vector<8x128xf32>
    %77 = math.tanh %76 : vector<8x128xf32>
    %78 = arith.mulf %77, %72 : vector<8x128xf32>
    %79 = arith.truncf %78 : vector<8x128xf32> to vector<8x128xbf16>
    %80 = arith.index_cast %63 : i32 to index
    %c0_30 = arith.constant 0 : index
    %81 = vector.load %arg12[%80, %c0_30] : memref<64x128xf32, #tpu.memory_space<vmem>>, vector<8x128xf32>
    tpu.vector_store %arg12[%80, %c0_30], %78 {strides = array<i32>} : memref<64x128xf32, #tpu.memory_space<vmem>>, vector<8x128xf32>,
    %c3_i32 = arith.constant 3 : i32
    %c8_i32_31 = arith.constant 8 : i32
    %82 = arith.muli %c3_i32, %c8_i32_31 : i32
    %83 = tpu.assume_multiple %82, 8 : i32
    %84 = arith.index_cast %83 : i32 to index
    %c0_32 = arith.constant 0 : index
    %85 = vector.load %arg11[%84, %c0_32] : memref<64x128xf32, #tpu.memory_space<vmem>>, vector<8x128xf32>
    %cst_33 = arith.constant dense<0.000000e+00> : vector<8x128xf32>
    %86 = tpu.matmul %79, %19, %cst_33 {dimension_numbers = #tpu.dot_dimension_numbers<[1], [0], [0], [1], [0, 0, 1, 1], [], []>} : vector<8x128xbf16>, vector<128x128xbf16>, vector<8x128xf32> -> vector<8x128xf32>
    %87 = arith.addf %85, %86 : vector<8x128xf32>
    %88 = arith.mulf %87, %8 : vector<8x128xf32>
    %89 = math.tanh %88 : vector<8x128xf32>
    %90 = arith.mulf %89, %8 : vector<8x128xf32>
    %91 = arith.addf %90, %11 : vector<8x128xf32>
    %c64_i32_34 = arith.constant 64 : i32
    %92 = tpu.dynamic_rotate %91 by %c64_i32_34 dim 1 : vector<8x128xf32>, i32 -> vector<8x128xf32>
    %93 = arith.mulf %91, %92 : vector<8x128xf32>
    %94 = arith.mulf %91, %76 : vector<8x128xf32>
    %c32_i32_35 = arith.constant 32 : i32
    %95 = tpu.dynamic_rotate %93 by %c32_i32_35 dim 1 : vector<8x128xf32>, i32 -> vector<8x128xf32>
    %96 = arith.addf %94, %95 : vector<8x128xf32>
    %97 = math.tanh %96 : vector<8x128xf32>
    %98 = arith.mulf %97, %92 : vector<8x128xf32>
    %99 = arith.truncf %98 : vector<8x128xf32> to vector<8x128xbf16>
    %100 = arith.index_cast %83 : i32 to index
    %c0_36 = arith.constant 0 : index
    %101 = vector.load %arg12[%100, %c0_36] : memref<64x128xf32, #tpu.memory_space<vmem>>, vector<8x128xf32>
    tpu.vector_store %arg12[%100, %c0_36], %98 {strides = array<i32>} : memref<64x128xf32, #tpu.memory_space<vmem>>, vector<8x128xf32>,
    %c4_i32 = arith.constant 4 : i32
    %c8_i32_37 = arith.constant 8 : i32
    %102 = arith.muli %c4_i32, %c8_i32_37 : i32
    %103 = tpu.assume_multiple %102, 8 : i32
    %104 = arith.index_cast %103 : i32 to index
    %c0_38 = arith.constant 0 : index
    %105 = vector.load %arg11[%104, %c0_38] : memref<64x128xf32, #tpu.memory_space<vmem>>, vector<8x128xf32>
    %cst_39 = arith.constant dense<0.000000e+00> : vector<8x128xf32>
    %106 = tpu.matmul %99, %19, %cst_39 {dimension_numbers = #tpu.dot_dimension_numbers<[1], [0], [0], [1], [0, 0, 1, 1], [], []>} : vector<8x128xbf16>, vector<128x128xbf16>, vector<8x128xf32> -> vector<8x128xf32>
    %107 = arith.addf %105, %106 : vector<8x128xf32>
    %108 = arith.mulf %107, %8 : vector<8x128xf32>
    %109 = math.tanh %108 : vector<8x128xf32>
    %110 = arith.mulf %109, %8 : vector<8x128xf32>
    %111 = arith.addf %110, %11 : vector<8x128xf32>
    %c64_i32_40 = arith.constant 64 : i32
    %112 = tpu.dynamic_rotate %111 by %c64_i32_40 dim 1 : vector<8x128xf32>, i32 -> vector<8x128xf32>
    %113 = arith.mulf %111, %112 : vector<8x128xf32>
    %114 = arith.mulf %111, %96 : vector<8x128xf32>
    %c32_i32_41 = arith.constant 32 : i32
    %115 = tpu.dynamic_rotate %113 by %c32_i32_41 dim 1 : vector<8x128xf32>, i32 -> vector<8x128xf32>
    %116 = arith.addf %114, %115 : vector<8x128xf32>
    %117 = math.tanh %116 : vector<8x128xf32>
    %118 = arith.mulf %117, %112 : vector<8x128xf32>
    %119 = arith.truncf %118 : vector<8x128xf32> to vector<8x128xbf16>
    %120 = arith.index_cast %103 : i32 to index
    %c0_42 = arith.constant 0 : index
    %121 = vector.load %arg12[%120, %c0_42] : memref<64x128xf32, #tpu.memory_space<vmem>>, vector<8x128xf32>
    tpu.vector_store %arg12[%120, %c0_42], %118 {strides = array<i32>} : memref<64x128xf32, #tpu.memory_space<vmem>>, vector<8x128xf32>,
    %c5_i32 = arith.constant 5 : i32
    %c8_i32_43 = arith.constant 8 : i32
    %122 = arith.muli %c5_i32, %c8_i32_43 : i32
    %123 = tpu.assume_multiple %122, 8 : i32
    %124 = arith.index_cast %123 : i32 to index
    %c0_44 = arith.constant 0 : index
    %125 = vector.load %arg11[%124, %c0_44] : memref<64x128xf32, #tpu.memory_space<vmem>>, vector<8x128xf32>
    %cst_45 = arith.constant dense<0.000000e+00> : vector<8x128xf32>
    %126 = tpu.matmul %119, %19, %cst_45 {dimension_numbers = #tpu.dot_dimension_numbers<[1], [0], [0], [1], [0, 0, 1, 1], [], []>} : vector<8x128xbf16>, vector<128x128xbf16>, vector<8x128xf32> -> vector<8x128xf32>
    %127 = arith.addf %125, %126 : vector<8x128xf32>
    %128 = arith.mulf %127, %8 : vector<8x128xf32>
    %129 = math.tanh %128 : vector<8x128xf32>
    %130 = arith.mulf %129, %8 : vector<8x128xf32>
    %131 = arith.addf %130, %11 : vector<8x128xf32>
    %c64_i32_46 = arith.constant 64 : i32
    %132 = tpu.dynamic_rotate %131 by %c64_i32_46 dim 1 : vector<8x128xf32>, i32 -> vector<8x128xf32>
    %133 = arith.mulf %131, %132 : vector<8x128xf32>
    %134 = arith.mulf %131, %116 : vector<8x128xf32>
    %c32_i32_47 = arith.constant 32 : i32
    %135 = tpu.dynamic_rotate %133 by %c32_i32_47 dim 1 : vector<8x128xf32>, i32 -> vector<8x128xf32>
    %136 = arith.addf %134, %135 : vector<8x128xf32>
    %137 = math.tanh %136 : vector<8x128xf32>
    %138 = arith.mulf %137, %132 : vector<8x128xf32>
    %139 = arith.truncf %138 : vector<8x128xf32> to vector<8x128xbf16>
    %140 = arith.index_cast %123 : i32 to index
    %c0_48 = arith.constant 0 : index
    %141 = vector.load %arg12[%140, %c0_48] : memref<64x128xf32, #tpu.memory_space<vmem>>, vector<8x128xf32>
    tpu.vector_store %arg12[%140, %c0_48], %138 {strides = array<i32>} : memref<64x128xf32, #tpu.memory_space<vmem>>, vector<8x128xf32>,
    %c6_i32 = arith.constant 6 : i32
    %c8_i32_49 = arith.constant 8 : i32
    %142 = arith.muli %c6_i32, %c8_i32_49 : i32
    %143 = tpu.assume_multiple %142, 8 : i32
    %144 = arith.index_cast %143 : i32 to index
    %c0_50 = arith.constant 0 : index
    %145 = vector.load %arg11[%144, %c0_50] : memref<64x128xf32, #tpu.memory_space<vmem>>, vector<8x128xf32>
    %cst_51 = arith.constant dense<0.000000e+00> : vector<8x128xf32>
    %146 = tpu.matmul %139, %19, %cst_51 {dimension_numbers = #tpu.dot_dimension_numbers<[1], [0], [0], [1], [0, 0, 1, 1], [], []>} : vector<8x128xbf16>, vector<128x128xbf16>, vector<8x128xf32> -> vector<8x128xf32>
    %147 = arith.addf %145, %146 : vector<8x128xf32>
    %148 = arith.mulf %147, %8 : vector<8x128xf32>
    %149 = math.tanh %148 : vector<8x128xf32>
    %150 = arith.mulf %149, %8 : vector<8x128xf32>
    %151 = arith.addf %150, %11 : vector<8x128xf32>
    %c64_i32_52 = arith.constant 64 : i32
    %152 = tpu.dynamic_rotate %151 by %c64_i32_52 dim 1 : vector<8x128xf32>, i32 -> vector<8x128xf32>
    %153 = arith.mulf %151, %152 : vector<8x128xf32>
    %154 = arith.mulf %151, %136 : vector<8x128xf32>
    %c32_i32_53 = arith.constant 32 : i32
    %155 = tpu.dynamic_rotate %153 by %c32_i32_53 dim 1 : vector<8x128xf32>, i32 -> vector<8x128xf32>
    %156 = arith.addf %154, %155 : vector<8x128xf32>
    %157 = math.tanh %156 : vector<8x128xf32>
    %158 = arith.mulf %157, %152 : vector<8x128xf32>
    %159 = arith.truncf %158 : vector<8x128xf32> to vector<8x128xbf16>
    %160 = arith.index_cast %143 : i32 to index
    %c0_54 = arith.constant 0 : index
    %161 = vector.load %arg12[%160, %c0_54] : memref<64x128xf32, #tpu.memory_space<vmem>>, vector<8x128xf32>
    tpu.vector_store %arg12[%160, %c0_54], %158 {strides = array<i32>} : memref<64x128xf32, #tpu.memory_space<vmem>>, vector<8x128xf32>,
    %c7_i32 = arith.constant 7 : i32
    %c8_i32_55 = arith.constant 8 : i32
    %162 = arith.muli %c7_i32, %c8_i32_55 : i32
    %163 = tpu.assume_multiple %162, 8 : i32
    %164 = arith.index_cast %163 : i32 to index
    %c0_56 = arith.constant 0 : index
    %165 = vector.load %arg11[%164, %c0_56] : memref<64x128xf32, #tpu.memory_space<vmem>>, vector<8x128xf32>
    %cst_57 = arith.constant dense<0.000000e+00> : vector<8x128xf32>
    %166 = tpu.matmul %159, %19, %cst_57 {dimension_numbers = #tpu.dot_dimension_numbers<[1], [0], [0], [1], [0, 0, 1, 1], [], []>} : vector<8x128xbf16>, vector<128x128xbf16>, vector<8x128xf32> -> vector<8x128xf32>
    %167 = arith.addf %165, %166 : vector<8x128xf32>
    %168 = arith.mulf %167, %8 : vector<8x128xf32>
    %169 = math.tanh %168 : vector<8x128xf32>
    %170 = arith.mulf %169, %8 : vector<8x128xf32>
    %171 = arith.addf %170, %11 : vector<8x128xf32>
    %c64_i32_58 = arith.constant 64 : i32
    %172 = tpu.dynamic_rotate %171 by %c64_i32_58 dim 1 : vector<8x128xf32>, i32 -> vector<8x128xf32>
    %173 = arith.mulf %171, %172 : vector<8x128xf32>
    %174 = arith.mulf %171, %156 : vector<8x128xf32>
    %c32_i32_59 = arith.constant 32 : i32
    %175 = tpu.dynamic_rotate %173 by %c32_i32_59 dim 1 : vector<8x128xf32>, i32 -> vector<8x128xf32>
    %176 = arith.addf %174, %175 : vector<8x128xf32>
    %177 = math.tanh %176 : vector<8x128xf32>
    %178 = arith.mulf %177, %172 : vector<8x128xf32>
    %179 = arith.truncf %178 : vector<8x128xf32> to vector<8x128xbf16>
    %180 = arith.index_cast %163 : i32 to index
    %c0_60 = arith.constant 0 : index
    %181 = vector.load %arg12[%180, %c0_60] : memref<64x128xf32, #tpu.memory_space<vmem>>, vector<8x128xf32>
    tpu.vector_store %arg12[%180, %c0_60], %178 {strides = array<i32>} : memref<64x128xf32, #tpu.memory_space<vmem>>, vector<8x128xf32>,
    %c8_i32_61 = arith.constant 8 : i32
    %c0_62 = arith.constant 0 : index
    %c0_63 = arith.constant 0 : index
    %182 = vector.load %arg12[%c0_62, %c0_63] : memref<64x128xf32, #tpu.memory_space<vmem>>, vector<64x128xf32>
    %183 = arith.truncf %182 : vector<64x128xf32> to vector<64x128xbf16>
    %c0_64 = arith.constant 0 : index
    %c0_65 = arith.constant 0 : index
    %184 = vector.load %arg5[%c0_64, %c0_65] : memref<128x128xbf16, #tpu.memory_space<vmem>>, vector<128x128xbf16>
    %cst_66 = arith.constant dense<0.000000e+00> : vector<64x128xf32>
    %185 = tpu.matmul %183, %184, %cst_66 {dimension_numbers = #tpu.dot_dimension_numbers<[1], [0], [0], [1], [0, 0, 1, 1], [], []>} : vector<64x128xbf16>, vector<128x128xbf16>, vector<64x128xf32> -> vector<64x128xf32>
    %c0_67 = arith.constant 0 : index
    %c0_68 = arith.constant 0 : index
    %186 = vector.load %arg7[%c0_67, %c0_68] : memref<1x128xf32, #tpu.memory_space<vmem>>, vector<1x128xf32>
    %187 = vector.broadcast %186 : vector<1x128xf32> to vector<64x128xf32>
    %188 = arith.addf %185, %187 : vector<64x128xf32>
    %c0_69 = arith.constant 0 : index
    %c0_70 = arith.constant 0 : index
    %189 = vector.load %arg11[%c0_69, %c0_70] : memref<64x128xf32, #tpu.memory_space<vmem>>, vector<64x128xf32>
    tpu.vector_store %arg11[%c0_69, %c0_70], %188 {strides = array<i32>} : memref<64x128xf32, #tpu.memory_space<vmem>>, vector<64x128xf32>,
    %c0_71 = arith.constant 0 : index
    %c0_72 = arith.constant 0 : index
    %190 = vector.load %arg6[%c0_71, %c0_72] : memref<128x128xbf16, #tpu.memory_space<vmem>>, vector<128x128xbf16>
    %cst_73 = arith.constant 0.000000e+00 : f32
    %191 = vector.broadcast %cst_73 : f32 to vector<8x128xf32>
    %cst_74 = arith.constant 0.000000e+00 : bf16
    %192 = vector.broadcast %cst_74 : bf16 to vector<8x128xbf16>
    %c0_i32_75 = arith.constant 0 : i32
    %c8_i32_76 = arith.constant 8 : i32
    %193 = arith.muli %c0_i32_75, %c8_i32_76 : i32
    %194 = tpu.assume_multiple %193, 8 : i32
    %195 = arith.index_cast %194 : i32 to index
    %c0_77 = arith.constant 0 : index
    %196 = vector.load %arg11[%195, %c0_77] : memref<64x128xf32, #tpu.memory_space<vmem>>, vector<8x128xf32>
    %cst_78 = arith.constant dense<0.000000e+00> : vector<8x128xf32>
    %197 = tpu.matmul %192, %190, %cst_78 {dimension_numbers = #tpu.dot_dimension_numbers<[1], [0], [0], [1], [0, 0, 1, 1], [], []>} : vector<8x128xbf16>, vector<128x128xbf16>, vector<8x128xf32> -> vector<8x128xf32>
    %198 = arith.addf %196, %197 : vector<8x128xf32>
    %199 = arith.mulf %198, %8 : vector<8x128xf32>
    %200 = math.tanh %199 : vector<8x128xf32>
    %201 = arith.mulf %200, %8 : vector<8x128xf32>
    %202 = arith.addf %201, %11 : vector<8x128xf32>
    %c64_i32_79 = arith.constant 64 : i32
    %203 = tpu.dynamic_rotate %202 by %c64_i32_79 dim 1 : vector<8x128xf32>, i32 -> vector<8x128xf32>
    %204 = arith.mulf %202, %203 : vector<8x128xf32>
    %205 = arith.mulf %202, %191 : vector<8x128xf32>
    %c32_i32_80 = arith.constant 32 : i32
    %206 = tpu.dynamic_rotate %204 by %c32_i32_80 dim 1 : vector<8x128xf32>, i32 -> vector<8x128xf32>
    %207 = arith.addf %205, %206 : vector<8x128xf32>
    %208 = math.tanh %207 : vector<8x128xf32>
    %209 = arith.mulf %208, %203 : vector<8x128xf32>
    %210 = arith.truncf %209 : vector<8x128xf32> to vector<8x128xbf16>
    %c1_i32_81 = arith.constant 1 : i32
    %c8_i32_82 = arith.constant 8 : i32
    %211 = arith.muli %c1_i32_81, %c8_i32_82 : i32
    %212 = tpu.assume_multiple %211, 8 : i32
    %213 = arith.index_cast %212 : i32 to index
    %c0_83 = arith.constant 0 : index
    %214 = vector.load %arg11[%213, %c0_83] : memref<64x128xf32, #tpu.memory_space<vmem>>, vector<8x128xf32>
    %cst_84 = arith.constant dense<0.000000e+00> : vector<8x128xf32>
    %215 = tpu.matmul %210, %190, %cst_84 {dimension_numbers = #tpu.dot_dimension_numbers<[1], [0], [0], [1], [0, 0, 1, 1], [], []>} : vector<8x128xbf16>, vector<128x128xbf16>, vector<8x128xf32> -> vector<8x128xf32>
    %216 = arith.addf %214, %215 : vector<8x128xf32>
    %217 = arith.mulf %216, %8 : vector<8x128xf32>
    %218 = math.tanh %217 : vector<8x128xf32>
    %219 = arith.mulf %218, %8 : vector<8x128xf32>
    %220 = arith.addf %219, %11 : vector<8x128xf32>
    %c64_i32_85 = arith.constant 64 : i32
    %221 = tpu.dynamic_rotate %220 by %c64_i32_85 dim 1 : vector<8x128xf32>, i32 -> vector<8x128xf32>
    %222 = arith.mulf %220, %221 : vector<8x128xf32>
    %223 = arith.mulf %220, %207 : vector<8x128xf32>
    %c32_i32_86 = arith.constant 32 : i32
    %224 = tpu.dynamic_rotate %222 by %c32_i32_86 dim 1 : vector<8x128xf32>, i32 -> vector<8x128xf32>
    %225 = arith.addf %223, %224 : vector<8x128xf32>
    %226 = math.tanh %225 : vector<8x128xf32>
    %227 = arith.mulf %226, %221 : vector<8x128xf32>
    %228 = arith.truncf %227 : vector<8x128xf32> to vector<8x128xbf16>
    %c2_i32_87 = arith.constant 2 : i32
    %c8_i32_88 = arith.constant 8 : i32
    %229 = arith.muli %c2_i32_87, %c8_i32_88 : i32
    %230 = tpu.assume_multiple %229, 8 : i32
    %231 = arith.index_cast %230 : i32 to index
    %c0_89 = arith.constant 0 : index
    %232 = vector.load %arg11[%231, %c0_89] : memref<64x128xf32, #tpu.memory_space<vmem>>, vector<8x128xf32>
    %cst_90 = arith.constant dense<0.000000e+00> : vector<8x128xf32>
    %233 = tpu.matmul %228, %190, %cst_90 {dimension_numbers = #tpu.dot_dimension_numbers<[1], [0], [0], [1], [0, 0, 1, 1], [], []>} : vector<8x128xbf16>, vector<128x128xbf16>, vector<8x128xf32> -> vector<8x128xf32>
    %234 = arith.addf %232, %233 : vector<8x128xf32>
    %235 = arith.mulf %234, %8 : vector<8x128xf32>
    %236 = math.tanh %235 : vector<8x128xf32>
    %237 = arith.mulf %236, %8 : vector<8x128xf32>
    %238 = arith.addf %237, %11 : vector<8x128xf32>
    %c64_i32_91 = arith.constant 64 : i32
    %239 = tpu.dynamic_rotate %238 by %c64_i32_91 dim 1 : vector<8x128xf32>, i32 -> vector<8x128xf32>
    %240 = arith.mulf %238, %239 : vector<8x128xf32>
    %241 = arith.mulf %238, %225 : vector<8x128xf32>
    %c32_i32_92 = arith.constant 32 : i32
    %242 = tpu.dynamic_rotate %240 by %c32_i32_92 dim 1 : vector<8x128xf32>, i32 -> vector<8x128xf32>
    %243 = arith.addf %241, %242 : vector<8x128xf32>
    %244 = math.tanh %243 : vector<8x128xf32>
    %245 = arith.mulf %244, %239 : vector<8x128xf32>
    %246 = arith.truncf %245 : vector<8x128xf32> to vector<8x128xbf16>
    %c3_i32_93 = arith.constant 3 : i32
    %c8_i32_94 = arith.constant 8 : i32
    %247 = arith.muli %c3_i32_93, %c8_i32_94 : i32
    %248 = tpu.assume_multiple %247, 8 : i32
    %249 = arith.index_cast %248 : i32 to index
    %c0_95 = arith.constant 0 : index
    %250 = vector.load %arg11[%249, %c0_95] : memref<64x128xf32, #tpu.memory_space<vmem>>, vector<8x128xf32>
    %cst_96 = arith.constant dense<0.000000e+00> : vector<8x128xf32>
    %251 = tpu.matmul %246, %190, %cst_96 {dimension_numbers = #tpu.dot_dimension_numbers<[1], [0], [0], [1], [0, 0, 1, 1], [], []>} : vector<8x128xbf16>, vector<128x128xbf16>, vector<8x128xf32> -> vector<8x128xf32>
    %252 = arith.addf %250, %251 : vector<8x128xf32>
    %253 = arith.mulf %252, %8 : vector<8x128xf32>
    %254 = math.tanh %253 : vector<8x128xf32>
    %255 = arith.mulf %254, %8 : vector<8x128xf32>
    %256 = arith.addf %255, %11 : vector<8x128xf32>
    %c64_i32_97 = arith.constant 64 : i32
    %257 = tpu.dynamic_rotate %256 by %c64_i32_97 dim 1 : vector<8x128xf32>, i32 -> vector<8x128xf32>
    %258 = arith.mulf %256, %257 : vector<8x128xf32>
    %259 = arith.mulf %256, %243 : vector<8x128xf32>
    %c32_i32_98 = arith.constant 32 : i32
    %260 = tpu.dynamic_rotate %258 by %c32_i32_98 dim 1 : vector<8x128xf32>, i32 -> vector<8x128xf32>
    %261 = arith.addf %259, %260 : vector<8x128xf32>
    %262 = math.tanh %261 : vector<8x128xf32>
    %263 = arith.mulf %262, %257 : vector<8x128xf32>
    %264 = arith.truncf %263 : vector<8x128xf32> to vector<8x128xbf16>
    %c4_i32_99 = arith.constant 4 : i32
    %c8_i32_100 = arith.constant 8 : i32
    %265 = arith.muli %c4_i32_99, %c8_i32_100 : i32
    %266 = tpu.assume_multiple %265, 8 : i32
    %267 = arith.index_cast %266 : i32 to index
    %c0_101 = arith.constant 0 : index
    %268 = vector.load %arg11[%267, %c0_101] : memref<64x128xf32, #tpu.memory_space<vmem>>, vector<8x128xf32>
    %cst_102 = arith.constant dense<0.000000e+00> : vector<8x128xf32>
    %269 = tpu.matmul %264, %190, %cst_102 {dimension_numbers = #tpu.dot_dimension_numbers<[1], [0], [0], [1], [0, 0, 1, 1], [], []>} : vector<8x128xbf16>, vector<128x128xbf16>, vector<8x128xf32> -> vector<8x128xf32>
    %270 = arith.addf %268, %269 : vector<8x128xf32>
    %271 = arith.mulf %270, %8 : vector<8x128xf32>
    %272 = math.tanh %271 : vector<8x128xf32>
    %273 = arith.mulf %272, %8 : vector<8x128xf32>
    %274 = arith.addf %273, %11 : vector<8x128xf32>
    %c64_i32_103 = arith.constant 64 : i32
    %275 = tpu.dynamic_rotate %274 by %c64_i32_103 dim 1 : vector<8x128xf32>, i32 -> vector<8x128xf32>
    %276 = arith.mulf %274, %275 : vector<8x128xf32>
    %277 = arith.mulf %274, %261 : vector<8x128xf32>
    %c32_i32_104 = arith.constant 32 : i32
    %278 = tpu.dynamic_rotate %276 by %c32_i32_104 dim 1 : vector<8x128xf32>, i32 -> vector<8x128xf32>
    %279 = arith.addf %277, %278 : vector<8x128xf32>
    %280 = math.tanh %279 : vector<8x128xf32>
    %281 = arith.mulf %280, %275 : vector<8x128xf32>
    %282 = arith.truncf %281 : vector<8x128xf32> to vector<8x128xbf16>
    %c5_i32_105 = arith.constant 5 : i32
    %c8_i32_106 = arith.constant 8 : i32
    %283 = arith.muli %c5_i32_105, %c8_i32_106 : i32
    %284 = tpu.assume_multiple %283, 8 : i32
    %285 = arith.index_cast %284 : i32 to index
    %c0_107 = arith.constant 0 : index
    %286 = vector.load %arg11[%285, %c0_107] : memref<64x128xf32, #tpu.memory_space<vmem>>, vector<8x128xf32>
    %cst_108 = arith.constant dense<0.000000e+00> : vector<8x128xf32>
    %287 = tpu.matmul %282, %190, %cst_108 {dimension_numbers = #tpu.dot_dimension_numbers<[1], [0], [0], [1], [0, 0, 1, 1], [], []>} : vector<8x128xbf16>, vector<128x128xbf16>, vector<8x128xf32> -> vector<8x128xf32>
    %288 = arith.addf %286, %287 : vector<8x128xf32>
    %289 = arith.mulf %288, %8 : vector<8x128xf32>
    %290 = math.tanh %289 : vector<8x128xf32>
    %291 = arith.mulf %290, %8 : vector<8x128xf32>
    %292 = arith.addf %291, %11 : vector<8x128xf32>
    %c64_i32_109 = arith.constant 64 : i32
    %293 = tpu.dynamic_rotate %292 by %c64_i32_109 dim 1 : vector<8x128xf32>, i32 -> vector<8x128xf32>
    %294 = arith.mulf %292, %293 : vector<8x128xf32>
    %295 = arith.mulf %292, %279 : vector<8x128xf32>
    %c32_i32_110 = arith.constant 32 : i32
    %296 = tpu.dynamic_rotate %294 by %c32_i32_110 dim 1 : vector<8x128xf32>, i32 -> vector<8x128xf32>
    %297 = arith.addf %295, %296 : vector<8x128xf32>
    %298 = math.tanh %297 : vector<8x128xf32>
    %299 = arith.mulf %298, %293 : vector<8x128xf32>
    %300 = arith.truncf %299 : vector<8x128xf32> to vector<8x128xbf16>
    %c6_i32_111 = arith.constant 6 : i32
    %c8_i32_112 = arith.constant 8 : i32
    %301 = arith.muli %c6_i32_111, %c8_i32_112 : i32
    %302 = tpu.assume_multiple %301, 8 : i32
    %303 = arith.index_cast %302 : i32 to index
    %c0_113 = arith.constant 0 : index
    %304 = vector.load %arg11[%303, %c0_113] : memref<64x128xf32, #tpu.memory_space<vmem>>, vector<8x128xf32>
    %cst_114 = arith.constant dense<0.000000e+00> : vector<8x128xf32>
    %305 = tpu.matmul %300, %190, %cst_114 {dimension_numbers = #tpu.dot_dimension_numbers<[1], [0], [0], [1], [0, 0, 1, 1], [], []>} : vector<8x128xbf16>, vector<128x128xbf16>, vector<8x128xf32> -> vector<8x128xf32>
    %306 = arith.addf %304, %305 : vector<8x128xf32>
    %307 = arith.mulf %306, %8 : vector<8x128xf32>
    %308 = math.tanh %307 : vector<8x128xf32>
    %309 = arith.mulf %308, %8 : vector<8x128xf32>
    %310 = arith.addf %309, %11 : vector<8x128xf32>
    %c64_i32_115 = arith.constant 64 : i32
    %311 = tpu.dynamic_rotate %310 by %c64_i32_115 dim 1 : vector<8x128xf32>, i32 -> vector<8x128xf32>
    %312 = arith.mulf %310, %311 : vector<8x128xf32>
    %313 = arith.mulf %310, %297 : vector<8x128xf32>
    %c32_i32_116 = arith.constant 32 : i32
    %314 = tpu.dynamic_rotate %312 by %c32_i32_116 dim 1 : vector<8x128xf32>, i32 -> vector<8x128xf32>
    %315 = arith.addf %313, %314 : vector<8x128xf32>
    %316 = math.tanh %315 : vector<8x128xf32>
    %317 = arith.mulf %316, %311 : vector<8x128xf32>
    %318 = arith.truncf %317 : vector<8x128xf32> to vector<8x128xbf16>
    %c7_i32_117 = arith.constant 7 : i32
    %c8_i32_118 = arith.constant 8 : i32
    %319 = arith.muli %c7_i32_117, %c8_i32_118 : i32
    %320 = tpu.assume_multiple %319, 8 : i32
    %321 = arith.index_cast %320 : i32 to index
    %c0_119 = arith.constant 0 : index
    %322 = vector.load %arg11[%321, %c0_119] : memref<64x128xf32, #tpu.memory_space<vmem>>, vector<8x128xf32>
    %cst_120 = arith.constant dense<0.000000e+00> : vector<8x128xf32>
    %323 = tpu.matmul %318, %190, %cst_120 {dimension_numbers = #tpu.dot_dimension_numbers<[1], [0], [0], [1], [0, 0, 1, 1], [], []>} : vector<8x128xbf16>, vector<128x128xbf16>, vector<8x128xf32> -> vector<8x128xf32>
    %324 = arith.addf %322, %323 : vector<8x128xf32>
    %325 = arith.mulf %324, %8 : vector<8x128xf32>
    %326 = math.tanh %325 : vector<8x128xf32>
    %327 = arith.mulf %326, %8 : vector<8x128xf32>
    %328 = arith.addf %327, %11 : vector<8x128xf32>
    %c64_i32_121 = arith.constant 64 : i32
    %329 = tpu.dynamic_rotate %328 by %c64_i32_121 dim 1 : vector<8x128xf32>, i32 -> vector<8x128xf32>
    %330 = arith.mulf %328, %329 : vector<8x128xf32>
    %331 = arith.mulf %328, %315 : vector<8x128xf32>
    %c32_i32_122 = arith.constant 32 : i32
    %332 = tpu.dynamic_rotate %330 by %c32_i32_122 dim 1 : vector<8x128xf32>, i32 -> vector<8x128xf32>
    %333 = arith.addf %331, %332 : vector<8x128xf32>
    %334 = math.tanh %333 : vector<8x128xf32>
    %335 = arith.mulf %334, %329 : vector<8x128xf32>
    %336 = arith.truncf %335 : vector<8x128xf32> to vector<8x128xbf16>
    %c8_i32_123 = arith.constant 8 : i32
    %c0_124 = arith.constant 0 : index
    %c0_125 = arith.constant 0 : index
    %337 = vector.load %arg8[%c0_124, %c0_125] : memref<128x128xbf16, #tpu.memory_space<vmem>>, vector<128x128xbf16>
    %cst_126 = arith.constant dense<0.000000e+00> : vector<8x128xf32>
    %338 = tpu.matmul %336, %337, %cst_126 {dimension_numbers = #tpu.dot_dimension_numbers<[1], [0], [0], [1], [0, 0, 1, 1], [], []>} : vector<8x128xbf16>, vector<128x128xbf16>, vector<8x128xf32> -> vector<8x128xf32>
    %c0_127 = arith.constant 0 : index
    %c0_128 = arith.constant 0 : index
    %339 = vector.load %arg9[%c0_127, %c0_128] : memref<1x128xf32, #tpu.memory_space<vmem>>, vector<1x128xf32>
    %340 = vector.broadcast %339 : vector<1x128xf32> to vector<8x128xf32>
    %341 = arith.addf %338, %340 : vector<8x128xf32>
    %c0_129 = arith.constant 0 : index
    %c0_130 = arith.constant 0 : index
    %342 = vector.load %arg10[%c0_129, %c0_130] : memref<8x128xf32, #tpu.memory_space<vmem>>, vector<8x128xf32>
    tpu.vector_store %arg10[%c0_129, %c0_130], %341 {strides = array<i32>} : memref<8x128xf32, #tpu.memory_space<vmem>>, vector<8x128xf32>,
    return
  }
  func.func @transform_0(%arg0: i32) -> (i32, i32) {
    %c0_i32 = arith.constant 0 : i32
    %c0_i32_0 = arith.constant 0 : i32
    %c0_i32_1 = arith.constant 0 : i32
    return %c0_i32, %c0_i32_0 : i32, i32
  }
  func.func @transform_1(%arg0: i32) -> (i32, i32) {
    %c0_i32 = arith.constant 0 : i32
    %c0_i32_0 = arith.constant 0 : i32
    %c0_i32_1 = arith.constant 0 : i32
    return %c0_i32, %c0_i32_0 : i32, i32
  }
  func.func @transform_2(%arg0: i32) -> (i32, i32) {
    %c0_i32 = arith.constant 0 : i32
    %c0_i32_0 = arith.constant 0 : i32
    %c0_i32_1 = arith.constant 0 : i32
    return %c0_i32, %c0_i32_0 : i32, i32
  }
  func.func @transform_3(%arg0: i32) -> (i32, i32) {
    %c0_i32 = arith.constant 0 : i32
    %c0_i32_0 = arith.constant 0 : i32
    %c0_i32_1 = arith.constant 0 : i32
    return %c0_i32, %c0_i32_0 : i32, i32
  }
  func.func @transform_4(%arg0: i32) -> (i32, i32) {
    %c0_i32 = arith.constant 0 : i32
    %c0_i32_0 = arith.constant 0 : i32
    %c0_i32_1 = arith.constant 0 : i32
    return %c0_i32, %c0_i32_0 : i32, i32
  }
  func.func @transform_5(%arg0: i32) -> (i32, i32) {
    %c0_i32 = arith.constant 0 : i32
    %c0_i32_0 = arith.constant 0 : i32
    %c0_i32_1 = arith.constant 0 : i32
    return %c0_i32, %c0_i32_0 : i32, i32
  }
  func.func @transform_6(%arg0: i32) -> (i32, i32) {
    %c0_i32 = arith.constant 0 : i32
    %c0_i32_0 = arith.constant 0 : i32
    %c0_i32_1 = arith.constant 0 : i32
    return %c0_i32, %c0_i32_0 : i32, i32
  }
  func.func @transform_7(%arg0: i32) -> (i32, i32) {
    %c0_i32 = arith.constant 0 : i32
    %c0_i32_0 = arith.constant 0 : i32
    %c0_i32_1 = arith.constant 0 : i32
    return %c0_i32, %c0_i32_0 : i32, i32
  }
  func.func @transform_8(%arg0: i32) -> (i32, i32) {
    %c0_i32 = arith.constant 0 : i32
    %c0_i32_0 = arith.constant 0 : i32
    %c0_i32_1 = arith.constant 0 : i32
    return %c0_i32, %c0_i32_0 : i32, i32
  }
  func.func @transform_9(%arg0: i32) -> (i32, i32) {
    %c0_i32 = arith.constant 0 : i32
    %c0_i32_0 = arith.constant 0 : i32
    %c0_i32_1 = arith.constant 0 : i32
    return %c0_i32, %c0_i32_0 : i32, i32
  }
}

</mosaic_0001>

<bundles_post_ra>
// kernel: tpu_custom_call.1
= control target key start
LH: loop header
LB: loop body
LE: loop exit
PB: predicated region body
PF: predicated region fallthrough
CT: control target
= control target key end

     0   :  { %14 = vsyncpa [#allocation5], 0  ;;  %s2991_s0 = inlined_call_operand.vmem [shape: bf16[64,16], index: 0, kind: input, shape index: {}]   ;;  %s2992_s1 = inlined_call_operand.vmem [shape: bf16[16,128], index: 1, kind: input, shape index: {}]   ;;  %s2993_s2 = inlined_call_operand.hbm [shape: bf16[128,128], index: 2, kind: input, shape index: {}]   ;;  %s2994_s3 = inlined_call_operand.vmem [shape: f32[1,128], index: 3, kind: input, shape index: {}]   ;;  %s2995_s4 = inlined_call_operand.hbm [shape: bf16[128,128], index: 4, kind: input, shape index: {}]   ;;  %s2996_s5 = inlined_call_operand.hbm [shape: bf16[128,128], index: 5, kind: input, shape index: {}]   ;;  %s2997_s6 = inlined_call_operand.vmem [shape: f32[1,128], index: 6, kind: input, shape index: {}]   ;;  %s2998_s7 = inlined_call_operand.hbm [shape: bf16[128,128], index: 7, kind: input, shape index: {}]   ;;  %s2999_s8 = inlined_call_operand.vmem [shape: f32[1,128], index: 8, kind: input, shape index: {}]   ;;  %s3000_s9 = inlined_call_operand.hbm [shape: f32[8,128], index: 9, kind: output, shape index: {}]  }
   0x1   :  { %15 = vsyncpa [#allocation8], 0 }
   0x2   :  { %16 = vsyncpa [#allocation11], 0 }
   0x3   :  { %17 = vsyncpa [#allocation6], 0  ;;  %s2364_s30 = smov [#allocation7]   ;;  %s2365_s11 = smov [#allocation4]  }
   0x4   :  { %s41_s10 = sshll.u32 %s2364_s30, 4  ;;  %s27_s12 = sshll.u32 %s2365_s11, 4  ;;  %s42_s10 = int_to_ptr.vmem [resolvable:$true] %s41_s10  ;;  %s28_s12 = int_to_ptr.vmem [resolvable:$true] %s27_s12 }
   0x5   :  { %s2264_s13 = scalar_lea.vmem %s42_s10, 1024  ;;  %p2269_p1 = scmp.lt.s32.totalorder %s42_s10, %s42_s10 }
   0x6   :  { %p2265_p0 = scmp.ne.s32.totalorder %s42_s10, %s2264_s13  ;;  %p2270_p2 = scmp.lt.s32.totalorder %s2264_s13, %s2264_s13 }
   0x8   :  { %p2271_p3 = por %p2270_p2, %p2269_p1 }
   0xa   :  { %p2272_p4 = pnand %p2271_p3, %p2265_p0 }
   0xc   :  { %2275 = shalt.err (!%p2272_p4)
}
   0xd   :  { %s2366_s14 = smov 64   ;;  %s2367_s15 = smov 4  }
   0xe   :  { %47 = dma.hbm_to_vmem [thread:$0]  %s2995_s4, 1024, %s42_s10, [#allocation8], %s2366_s14, %s2366_s14, %s2367_s15  }
   0xf   :  { %s2284_s18 = scalar_lea.vmem %s28_s12, 1024  ;;  %p2289_p6 = scmp.lt.s32.totalorder %s28_s12, %s28_s12 }
  0x10   :  { %p2285_p5 = scmp.ne.s32.totalorder %s28_s12, %s2284_s18  ;;  %p2290_p7 = scmp.lt.s32.totalorder %s2284_s18, %s2284_s18 }
  0x12   :  { %p2291_p8 = por %p2290_p7, %p2289_p6 }
  0x14   :  { %p2292_p9 = pnand %p2291_p8, %p2285_p5 }
  0x16   :  { %2295 = shalt.err (!%p2292_p9)
}
  0x17   :  { %33 = dma.hbm_to_vmem [thread:$0]  %s2993_s2, 1024, %s28_s12, [#allocation5], %s2366_s14, %s2366_s14, %s2367_s15  }
  0x18   :  { %s2368_s21 = smov [#allocation9]   ;;  %s2369_s23 = smov [#allocation10]  }
  0x19   :  { %s53_s22 = sshll.u32 %s2368_s21, 4  ;;  %s67_s24 = sshll.u32 %s2369_s23, 4  ;;  %s54_s22 = int_to_ptr.vmem [resolvable:$true] %s53_s22  ;;  %s68_s24 = int_to_ptr.vmem [resolvable:$true] %s67_s24 }
  0x1a   :  { %s2304_s4 = scalar_lea.vmem %s54_s22, 1024  ;;  %p2309_p11 = scmp.lt.s32.totalorder %s54_s22, %s54_s22 }
  0x1b   :  { %p2305_p10 = scmp.ne.s32.totalorder %s54_s22, %s2304_s4  ;;  %p2310_p12 = scmp.lt.s32.totalorder %s2304_s4, %s2304_s4 }
  0x1d   :  { %p2311_p13 = por %p2310_p12, %p2309_p11 }
  0x1f   :  { %p2312_p0 = pnand %p2311_p13, %p2305_p10 }
  0x21   :  { %2315 = shalt.err (!%p2312_p0)
}
  0x22   :  { %59 = dma.hbm_to_vmem [thread:$0]  %s2996_s5, 1024, %s54_s22, [#allocation8], %s2366_s14, %s2366_s14, %s2367_s15  }
  0x23   :  { %s2324_s2 = scalar_lea.vmem %s68_s24, 1024  ;;  %p2329_p2 = scmp.lt.s32.totalorder %s68_s24, %s68_s24 }
  0x24   :  { %p2325_p1 = scmp.ne.s32.totalorder %s68_s24, %s2324_s2  ;;  %p2330_p3 = scmp.lt.s32.totalorder %s2324_s2, %s2324_s2 }
  0x26   :  { %p2331_p4 = por %p2330_p3, %p2329_p2 }
  0x28   :  { %p2332_p5 = pnand %p2331_p4, %p2325_p1 }
  0x2a   :  { %2335 = shalt.err (!%p2332_p5)
}
  0x2b   :  { %73 = dma.hbm_to_vmem [thread:$0]  %s2998_s7, 1024, %s68_s24, [#allocation11], %s2366_s14, %s2366_s14, %s2367_s15  }
  0x2c   :  { %2356 = dma.done.wait [#allocation5], 1024  }
  0x2d   :  { %2357 = vsyncadd [#allocation5], 4294966272 }
  0x2e   :  { %2358 = dma.done.wait [#allocation8], 2048  }
  0x2f   :  { %2359 = vsyncadd [#allocation8], 4294965248 }
  0x30   :  { %2360 = dma.done.wait [#allocation11], 1024  }
  0x31   :  { %2361 = vsyncadd [#allocation11], 4294966272  ;;  %v2370_v0 = vmov 0.0   ;;  %vm2371_vm0 = vmmov 0   ;;  %v2453_v1 = vld [vmem:[#allocation4 + $0x38] sm:$0xff]   ;;  %v2456_v2 = vld [vmem:[#allocation4 + $0x30] sm:$0xff]   ;;  %v89_v13 = vlaneseq }
  0x32   :  { %1779 = vmatprep.subr.bf16.mxu1 %v2370_v0  ;;  %1795 = vmatprep.mubr.msk.bf16.mxu1 %vm2371_vm0, %v2370_v0  ;;  %v2459_v3 = vld [vmem:[#allocation4 + $0x28] sm:$0xff]   ;;  %v2160_v4 = vld [vmem:[%s2992_s1] sm:$0xff]   ;;  %vm139_vm1 = vcmask 130048   ;;  %v2479_v8 = vld [vmem:[#allocation4 + $0x18] sm:$0xff]   ;;  %v2372_v12 = vmov 0   ;;  %v2373_v19 = vmov 0.5  }
  0x33   :  { %1780 = vmatpush3.bf16.msra.mxu1 %v2453_v1  ;;  %v2161_v5 = vld [vmem:[%s2991_s0] sm:$0xff]   ;;  %1769 = vmatprep.subr.bf16.mxu0 %v2160_v4  ;;  %v2163_v6 = vld [vmem:[%s2991_s0 + $0x8] sm:$0xff]   ;;  %v2485_v9 = vld [vmem:[#allocation4 + $0x10] sm:$0xff]   ;;  %v90_v14 = vand.u32 127, %v89_v13  ;;  %s2374_s17 = smov 32   ;;  %s2375_s19 = smov [#allocation12]  }
  0x34   :  { %1781 = vmatprep.subr.bf16.mxu1 %v2370_v0  ;;  %1770 = vmatpush3.bf16.msra.mxu0 %v2160_v4  ;;  %v2475_v7 = vld [vmem:[#allocation4 + $0x20] sm:$0xff]   ;;  %v2491_v10 = vld [vmem:[#allocation4 + $0x8] sm:$0xff]   ;;  %v2166_v31 = vld [vmem:[%s2991_s0 + $0x10] sm:$0xff]   ;;  %s1544_s20 = sshll.u32 %s2375_s19, 4  ;;  %s1545_s20 = int_to_ptr.vmem [resolvable:$true] %s1544_s20 }
  0x35   :  { %1771 = vmatprep.mubr.msk.bf16.mxu0 %vm139_vm1, %v2161_v5  ;;  %1799 = vmatprep.subr.bf16.mxu0 %v2370_v0  ;;  %v2497_v11 = vld [vmem:[#allocation4] sm:$0xff]   ;;  %vm91_vm2 = vcmp.ge.s32.totalorder %v90_v14, 64  ;;  %vm92_vm3 = vcmp.lt.s32.totalorder %v90_v14, 96  ;;  %v2167_v32 = vld [vmem:[%s2991_s0 + $0x18] sm:$0xff]   ;;  %s2336_s21 = scalar_lea.vmem %s1545_s20, 128  ;;  %p2341_p7 = scmp.lt.s32.totalorder %s1545_s20, %s1545_s20 }
  0x36   :  { %v2537_v16 = vld [vmem:[%s2994_s3] ss:$0 sm:$0xff]  ;;  %vm93_vm4 = vmand %vm91_vm2, %vm92_vm3  ;;  %p2337_p6 = scmp.ne.s32.totalorder %s1545_s20, %s2336_s21  ;;  %p2342_p8 = scmp.lt.s32.totalorder %s2336_s21, %s2336_s21 }
  0x37   :  { %1782 = vmatpush3.bf16.msra.mxu1 %v2456_v2  ;;  %1772 = vmatmul.mubr.msk.bf16.vlgmr.msra.gmra.mxu0 %vm139_vm1, %v2163_v6  ;;  %v2540_v20 = vsel %vm93_vm4, 1.0, %v2373_v19  ;;  %v2543_v28 = vsel %vm93_vm4, 0.0, %v2373_v19 }
  0x38   :  { %1783 = vmatprep.subr.bf16.mxu1 %v2370_v0  ;;  %1800 = vmatpush3.bf16.msra.mxu0 %v2453_v1  ;;  %p2343_p9 = por %p2342_p8, %p2341_p7 }
  0x39   :  { %1801 = vmatprep.subr.bf16.mxu0 %v2370_v0  ;;  %1775 = vmatprep.mubr.msk.bf16.mxu0 %vm139_vm1, %v2166_v31 }
  0x3a   :  { %p2344_p10 = pnand %p2343_p9, %p2337_p6 }
  0x3b   :  { %1784 = vmatpush3.bf16.msra.mxu1 %v2459_v3 }
  0x3c   :  { %1785 = vmatprep.subr.bf16.mxu1 %v2370_v0  ;;  %1802 = vmatpush3.bf16.msra.mxu0 %v2456_v2 }
  0x3d   :  { %1803 = vmatprep.subr.bf16.mxu0 %v2370_v0 }
  0x3f   :  { %1786 = vmatpush3.bf16.msra.mxu1 %v2475_v7  ;;  %1776 = vmatmul.mubr.msk.bf16.gmra.mxu0 %vm139_vm1, %v2167_v32 }
  0x40   :  { %1787 = vmatprep.subr.bf16.mxu1 %v2370_v0  ;;  %1804 = vmatpush3.bf16.msra.mxu0 %v2459_v3 }
  0x41   :  { %1805 = vmatprep.subr.bf16.mxu0 %v2370_v0  ;;  %1815 = vmatprep.mubr.msk.bf16.mxu0 %vm2371_vm0, %v2370_v0 }
  0x43   :  { %1788 = vmatpush3.bf16.msra.mxu1 %v2479_v8 }
  0x44   :  { %1789 = vmatprep.subr.bf16.mxu1 %v2370_v0  ;;  %1806 = vmatpush3.bf16.msra.mxu0 %v2475_v7 }
  0x45   :  { %1807 = vmatprep.subr.bf16.mxu0 %v2370_v0 }
  0x47   :  { %1790 = vmatpush3.bf16.msra.mxu1 %v2485_v9 }
  0x48   :  { %1791 = vmatprep.subr.bf16.mxu1 %v2370_v0  ;;  %1808 = vmatpush3.bf16.msra.mxu0 %v2479_v8 }
  0x49   :  { %1809 = vmatprep.subr.bf16.mxu0 %v2370_v0 }
  0x4b   :  { %1792 = vmatpush3.bf16.msra.mxu1 %v2491_v10 }
  0x4c   :  { %1793 = vmatprep.subr.bf16.mxu1 %v2370_v0  ;;  %1810 = vmatpush3.bf16.msra.mxu0 %v2485_v9 }
  0x4d   :  { %1811 = vmatprep.subr.bf16.mxu0 %v2370_v0 }
  0x4f   :  { %1794 = vmatpush3.bf16.msra.mxu1 %v2497_v11 }
  0x50   :  { %1819 = vmatprep.subr.bf16.mxu1 %v2370_v0  ;;  %1812 = vmatpush3.bf16.msra.mxu0 %v2491_v10 }
  0x51   :  { %1813 = vmatprep.subr.bf16.mxu0 %v2370_v0 }
  0x52   :  { %1796 = vmatmul.mubr.bf16.vlgmr.msra.gmra.mxu1 %v2372_v12 }
  0x53   :  { %1820 = vmatpush3.bf16.msra.mxu1 %v2453_v1  ;;  %1835 = vmatprep.mubr.msk.bf16.mxu1 %vm2371_vm0, %v2370_v0 }
  0x54   :  { %1821 = vmatprep.subr.bf16.mxu1 %v2370_v0  ;;  %1814 = vmatpush3.bf16.msra.mxu0 %v2497_v11 }
  0x55   :  { %1839 = vmatprep.subr.bf16.mxu0 %v2370_v0 }
  0x57   :  { %1822 = vmatpush3.bf16.msra.mxu1 %v2456_v2 }
  0x58   :  { %1823 = vmatprep.subr.bf16.mxu1 %v2370_v0 }
  0x5b   :  { %1824 = vmatpush3.bf16.msra.mxu1 %v2459_v3 }
  0x5c   :  { %1825 = vmatprep.subr.bf16.mxu1 %v2370_v0 }
  0x5f   :  { %1826 = vmatpush3.bf16.msra.mxu1 %v2475_v7 }
  0x60   :  { %1827 = vmatprep.subr.bf16.mxu1 %v2370_v0 }
  0x63   :  { %1828 = vmatpush3.bf16.msra.mxu1 %v2479_v8 }
  0x64   :  { %1829 = vmatprep.subr.bf16.mxu1 %v2370_v0 }
  0x67   :  { %1830 = vmatpush3.bf16.msra.mxu1 %v2485_v9 }
  0x68   :  { %1831 = vmatprep.subr.bf16.mxu1 %v2370_v0 }
  0x6b   :  { %1832 = vmatpush3.bf16.msra.mxu1 %v2491_v10 }
  0x6c   :  { %1833 = vmatprep.subr.bf16.mxu1 %v2370_v0 }
  0x6f   :  { %1834 = vmatpush3.bf16.msra.mxu1 %v2497_v11 }
  0x70   :  { %1859 = vmatprep.subr.bf16.mxu1 %v2370_v0 }
  0xf7   :  { %v2532_v15 = vpop.f32.mrf.mxu0 }
  0xf8   :  { %v195_v5 = vadd.f32 %v2532_v15, %v2537_v16 }
  0xf9   :  { %v186_v17 = vpop.f32.mrf.mxu0 }
  0xfa   :  { %v187_v18 = vadd.f32 %v2537_v16, %v186_v17 }
  0xfb   :  { %v2581_v41 = vpop.f32.mrf.mxu0 }
  0xfc   :  { %v198_v32 = vadd.f32 %v2581_v41, %v2537_v16 }
  0xfd   :  { %v189_v42 = vpop.f32.mrf.mxu0 }
  0xfe   :  { %v190_v47 = vadd.f32 %v2537_v16, %v189_v42 }
  0xff   :  { %v2583_v43 = vpop.f32.mrf.mxu0 }
 0x101   :  { %v2585_v44 = vpop.f32.mrf.mxu0 }
 0x103   :  { %v2587_v45 = vpop.f32.mrf.mxu0 }
 0x105   :  { %v2589_v46 = vpop.f32.mrf.mxu0 }
 0x112   :  { %v324_v21 = vpop.f32.mrf.mxu1 }
 0x113   :  { %v330_v22 = vadd.f32 %v324_v21, %v187_v18 }
 0x114   :  { %v1797_v23 = vpop.f32.mrf.mxu1 }
 0x115   :  { %v331_v24 = vmul.f32 %v330_v22, %v2540_v20 }
 0x116   :  { %v327_v25 = vpop.f32.mrf.mxu1 }
 0x117   :  { %2192 = vtanh.f32 %v331_v24 }
 0x118   :  { %v1798_v26 = vpop.f32.mrf.mxu1 }
 0x124   :  { %v2193_v27 = vpop.eup %2192 }
 0x125   :  { %v333_v29 = vmul.f32 %v2193_v27, %v2540_v20 }
 0x127   :  { %v334_v30 = vadd.f32 %v333_v29, %v2543_v28 }
 0x129   :  { %335 = vrot.lane.b32.xlu0 %v334_v30, %s2366_s14  ;;  %v338_v35 = vmul.f32 0.0, %v334_v30 }
 0x19b   :  { %v336_v33 = vpop.permute.xlu0 %335 }
 0x19c   :  { %v337_v34 = vmul.f32 %v336_v33, %v334_v30 }
 0x19e   :  { %339 = vrot.lane.b32.xlu0 %v337_v34, %s2374_s17 }
 0x210   :  { %v340_v36 = vpop.permute.xlu0 %339 }
 0x211   :  { %v341_v37 = vadd.f32 %v340_v36, %v338_v35 }
 0x213   :  { %2194 = vtanh.f32 %v341_v37 }
 0x220   :  { %v2195_v38 = vpop.eup %2194 }
 0x221   :  { %v2559_v39 = vmul.f32 %v2195_v38, %v336_v33 }
 0x223   :  { %v344_v40 = vpack.c.bf16 %v2559_v39, %v2559_v39 }
 0x225   :  { %1816 = vmatmul.mubr.bf16.vlgmr.msra.gmra.mxu0 %v344_v40 }
 0x226   :  { %1840 = vmatpush3.bf16.msra.mxu0 %v2453_v1  ;;  %1855 = vmatprep.mubr.msk.bf16.mxu0 %vm2371_vm0, %v2370_v0 }
 0x227   :  { %1841 = vmatprep.subr.bf16.mxu0 %v2370_v0 }
 0x22a   :  { %1842 = vmatpush3.bf16.msra.mxu0 %v2456_v2 }
 0x22b   :  { %1843 = vmatprep.subr.bf16.mxu0 %v2370_v0 }
 0x22e   :  { %1844 = vmatpush3.bf16.msra.mxu0 %v2459_v3 }
 0x22f   :  { %1845 = vmatprep.subr.bf16.mxu0 %v2370_v0 }
 0x232   :  { %1846 = vmatpush3.bf16.msra.mxu0 %v2475_v7 }
 0x233   :  { %1847 = vmatprep.subr.bf16.mxu0 %v2370_v0 }
 0x236   :  { %1848 = vmatpush3.bf16.msra.mxu0 %v2479_v8 }
 0x237   :  { %1849 = vmatprep.subr.bf16.mxu0 %v2370_v0 }
 0x23a   :  { %1850 = vmatpush3.bf16.msra.mxu0 %v2485_v9 }
 0x23b   :  { %1851 = vmatprep.subr.bf16.mxu0 %v2370_v0 }
 0x23e   :  { %1852 = vmatpush3.bf16.msra.mxu0 %v2491_v10 }
 0x23f   :  { %1853 = vmatprep.subr.bf16.mxu0 %v2370_v0 }
 0x242   :  { %1854 = vmatpush3.bf16.msra.mxu0 %v2497_v11 }
 0x243   :  { %1879 = vmatprep.subr.bf16.mxu0 %v2370_v0 }
 0x2e5   :  { %v382_v48 = vpop.f32.mrf.mxu0 }
 0x2e6   :  { %v388_v49 = vadd.f32 %v382_v48, %v190_v47 }
 0x2e7   :  { %v1817_v50 = vpop.f32.mrf.mxu0 }
 0x2e8   :  { %v389_v51 = vmul.f32 %v388_v49, %v2540_v20 }
 0x2e9   :  { %v385_v52 = vpop.f32.mrf.mxu0 }
 0x2ea   :  { %2196 = vtanh.f32 %v389_v51 }
 0x2eb   :  { %v1818_v53 = vpop.f32.mrf.mxu0 }
 0x2f7   :  { %v2197_v54 = vpop.eup %2196 }
 0x2f8   :  { %v391_v55 = vmul.f32 %v2197_v54, %v2540_v20 }
 0x2fa   :  { %v392_v56 = vadd.f32 %v391_v55, %v2543_v28  ;;  %v203_v55 = vadd.f32 %v2537_v16, %v2585_v44 }
 0x2fc   :  { %393 = vrot.lane.b32.xlu1 %v392_v56, %s2366_s14  ;;  %v396_v59 = vmul.f32 %v392_v56, %v341_v37 }
 0x36e   :  { %v394_v57 = vpop.permute.xlu1 %393 }
 0x36f   :  { %v395_v58 = vmul.f32 %v394_v57, %v392_v56 }
 0x371   :  { %397 = vrot.lane.b32.xlu1 %v395_v58, %s2374_s17 }
 0x3e3   :  { %v398_v60 = vpop.permute.xlu1 %397 }
 0x3e4   :  { %v399_v61 = vadd.f32 %v398_v60, %v396_v59 }
 0x3e6   :  { %2198 = vtanh.f32 %v399_v61 }
 0x3f3   :  { %v2199_v62 = vpop.eup %2198 }
 0x3f4   :  { %v2597_v63 = vmul.f32 %v2199_v62, %v394_v57 }
 0x3f6   :  { %v402_v4 = vpack.c.bf16 %v2597_v63, %v2597_v63 }
 0x3f8   :  { %1836 = vmatmul.mubr.bf16.vlgmr.msra.gmra.mxu1 %v402_v4 }
 0x3f9   :  { %1860 = vmatpush3.bf16.msra.mxu1 %v2453_v1  ;;  %1875 = vmatprep.mubr.msk.bf16.mxu1 %vm2371_vm0, %v2370_v0 }
 0x3fa   :  { %1861 = vmatprep.subr.bf16.mxu1 %v2370_v0 }
 0x3fd   :  { %1862 = vmatpush3.bf16.msra.mxu1 %v2456_v2 }
 0x3fe   :  { %1863 = vmatprep.subr.bf16.mxu1 %v2370_v0 }
 0x401   :  { %1864 = vmatpush3.bf16.msra.mxu1 %v2459_v3 }
 0x402   :  { %1865 = vmatprep.subr.bf16.mxu1 %v2370_v0 }
 0x405   :  { %1866 = vmatpush3.bf16.msra.mxu1 %v2475_v7 }
 0x406   :  { %1867 = vmatprep.subr.bf16.mxu1 %v2370_v0 }
 0x409   :  { %1868 = vmatpush3.bf16.msra.mxu1 %v2479_v8 }
 0x40a   :  { %1869 = vmatprep.subr.bf16.mxu1 %v2370_v0 }
 0x40d   :  { %1870 = vmatpush3.bf16.msra.mxu1 %v2485_v9 }
 0x40e   :  { %1871 = vmatprep.subr.bf16.mxu1 %v2370_v0 }
 0x411   :  { %1872 = vmatpush3.bf16.msra.mxu1 %v2491_v10 }
 0x412   :  { %1873 = vmatprep.subr.bf16.mxu1 %v2370_v0 }
 0x415   :  { %1874 = vmatpush3.bf16.msra.mxu1 %v2497_v11 }
 0x416   :  { %1899 = vmatprep.subr.bf16.mxu1 %v2370_v0 }
 0x4b8   :  { %v441_v6 = vpop.f32.mrf.mxu1 }
 0x4b9   :  { %v447_v13 = vadd.f32 %v441_v6, %v195_v5 }
 0x4ba   :  { %v1837_v14 = vpop.f32.mrf.mxu1 }
 0x4bb   :  { %v448_v17 = vmul.f32 %v447_v13, %v2540_v20 }
 0x4bc   :  { %v444_v18 = vpop.f32.mrf.mxu1 }
 0x4bd   :  { %2200 = vtanh.f32 %v448_v17 }
 0x4be   :  { %v1838_v19 = vpop.f32.mrf.mxu1 }
 0x4ca   :  { %v2201_v21 = vpop.eup %2200 }
 0x4cb   :  { %v450_v22 = vmul.f32 %v2201_v21, %v2540_v20 }
 0x4cd   :  { %v451_v23 = vadd.f32 %v450_v22, %v2543_v28 }
 0x4cf   :  { %452 = vrot.lane.b32.xlu0 %v451_v23, %s2366_s14  ;;  %v455_v15 = vmul.f32 %v451_v23, %v399_v61 }
 0x541   :  { %v453_v24 = vpop.permute.xlu0 %452 }
 0x542   :  { %v454_v25 = vmul.f32 %v453_v24, %v451_v23 }
 0x544   :  { %456 = vrot.lane.b32.xlu1 %v454_v25, %s2374_s17 }
 0x5b6   :  { %v457_v26 = vpop.permute.xlu1 %456 }
 0x5b7   :  { %v458_v27 = vadd.f32 %v457_v26, %v455_v15 }
 0x5b9   :  { %2202 = vtanh.f32 %v458_v27 }
 0x5c6   :  { %v2203_v29 = vpop.eup %2202 }
 0x5c7   :  { %v2626_v30 = vmul.f32 %v2203_v29, %v453_v24 }
 0x5c9   :  { %v461_v31 = vpack.c.bf16 %v2626_v30, %v2626_v30 }
 0x5cb   :  { %1856 = vmatmul.mubr.bf16.vlgmr.msra.gmra.mxu0 %v461_v31 }
 0x5cc   :  { %1880 = vmatpush3.bf16.msra.mxu0 %v2453_v1  ;;  %1895 = vmatprep.mubr.msk.bf16.mxu0 %vm2371_vm0, %v2370_v0 }
 0x5cd   :  { %1881 = vmatprep.subr.bf16.mxu0 %v2370_v0 }
 0x5d0   :  { %1882 = vmatpush3.bf16.msra.mxu0 %v2456_v2 }
 0x5d1   :  { %1883 = vmatprep.subr.bf16.mxu0 %v2370_v0 }
 0x5d4   :  { %1884 = vmatpush3.bf16.msra.mxu0 %v2459_v3 }
 0x5d5   :  { %1885 = vmatprep.subr.bf16.mxu0 %v2370_v0 }
 0x5d8   :  { %1886 = vmatpush3.bf16.msra.mxu0 %v2475_v7 }
 0x5d9   :  { %1887 = vmatprep.subr.bf16.mxu0 %v2370_v0 }
 0x5dc   :  { %1888 = vmatpush3.bf16.msra.mxu0 %v2479_v8 }
 0x5dd   :  { %1889 = vmatprep.subr.bf16.mxu0 %v2370_v0 }
 0x5e0   :  { %1890 = vmatpush3.bf16.msra.mxu0 %v2485_v9 }
 0x5e1   :  { %1891 = vmatprep.subr.bf16.mxu0 %v2370_v0 }
 0x5e4   :  { %1892 = vmatpush3.bf16.msra.mxu0 %v2491_v10 }
 0x5e5   :  { %1893 = vmatprep.subr.bf16.mxu0 %v2370_v0 }
 0x5e8   :  { %1894 = vmatpush3.bf16.msra.mxu0 %v2497_v11 }
 0x5e9   :  { %1919 = vmatprep.subr.bf16.mxu0 %v2370_v0 }
 0x68b   :  { %v500_v33 = vpop.f32.mrf.mxu0 }
 0x68c   :  { %v506_v34 = vadd.f32 %v500_v33, %v198_v32  ;;  %v2169_v33 = vld [vmem:[#allocation7 + $0x30] sm:$0xff]  }
 0x68d   :  { %v1857_v35 = vpop.f32.mrf.mxu0 }
 0x68e   :  { %v507_v36 = vmul.f32 %v506_v34, %v2540_v20  ;;  %v766_v34 = vpack.c.bf16 %v2597_v63, %v2559_v39  ;;  %v2170_v35 = vld [vmem:[#allocation7 + $0x28] sm:$0xff]   ;;  %v2175_v39 = vld [vmem:[#allocation7] sm:$0xff]  }
 0x68f   :  { %v503_v37 = vpop.f32.mrf.mxu0 }
 0x690   :  { %2204 = vtanh.f32 %v507_v36  ;;  %v2171_v36 = vld [vmem:[#allocation7 + $0x20] sm:$0xff]   ;;  %v2172_v37 = vld [vmem:[#allocation7 + $0x18] sm:$0xff]  }
 0x691   :  { %v1858_v38 = vpop.f32.mrf.mxu0 }
 0x692   :  { %v2173_v38 = vld [vmem:[#allocation7 + $0x10] sm:$0xff]  }
 0x69d   :  { %v2205_v40 = vpop.eup %2204 }
 0x69e   :  { %v509_v42 = vmul.f32 %v2205_v40, %v2540_v20  ;;  %v2174_v40 = vld [vmem:[#allocation7 + $0x8] sm:$0xff]  }
 0x6a0   :  { %v510_v47 = vadd.f32 %v509_v42, %v2543_v28 }
 0x6a2   :  { %511 = vrot.lane.b32.xlu0 %v510_v47, %s2366_s14  ;;  %v514_v41 = vmul.f32 %v510_v47, %v458_v27 }
 0x714   :  { %v512_v48 = vpop.permute.xlu0 %511 }
 0x715   :  { %v513_v49 = vmul.f32 %v512_v48, %v510_v47  ;;  %v211_v47 = vadd.f32 %v2583_v43, %v2537_v16  ;;  %v2728_v43 = vld [vmem:[#allocation9 + $0x38] sm:$0xff]  }
 0x717   :  { %515 = vrot.lane.b32.xlu1 %v513_v49, %s2374_s17 }
 0x789   :  { %v516_v50 = vpop.permute.xlu1 %515 }
 0x78a   :  { %v517_v51 = vadd.f32 %v516_v50, %v514_v41 }
 0x78c   :  { %2206 = vtanh.f32 %v517_v51 }
 0x799   :  { %v2207_v52 = vpop.eup %2206 }
 0x79a   :  { %v2655_v53 = vmul.f32 %v2207_v52, %v512_v48 }
 0x79c   :  { %v520_v54 = vpack.c.bf16 %v2655_v53, %v2655_v53  ;;  %v767_v63 = vpack.c.bf16 %v2655_v53, %v2626_v30 }
 0x79e   :  { %1876 = vmatmul.mubr.bf16.vlgmr.msra.gmra.mxu1 %v520_v54 }
 0x79f   :  { %1900 = vmatpush3.bf16.msra.mxu1 %v2453_v1  ;;  %1915 = vmatprep.mubr.msk.bf16.mxu1 %vm2371_vm0, %v2370_v0 }
 0x7a0   :  { %1901 = vmatprep.subr.bf16.mxu1 %v2370_v0 }
 0x7a3   :  { %1902 = vmatpush3.bf16.msra.mxu1 %v2456_v2 }
 0x7a4   :  { %1903 = vmatprep.subr.bf16.mxu1 %v2370_v0 }
 0x7a7   :  { %1904 = vmatpush3.bf16.msra.mxu1 %v2459_v3 }
 0x7a8   :  { %1905 = vmatprep.subr.bf16.mxu1 %v2370_v0 }
 0x7ab   :  { %1906 = vmatpush3.bf16.msra.mxu1 %v2475_v7 }
 0x7ac   :  { %1907 = vmatprep.subr.bf16.mxu1 %v2370_v0 }
 0x7af   :  { %1908 = vmatpush3.bf16.msra.mxu1 %v2479_v8 }
 0x7b0   :  { %1909 = vmatprep.subr.bf16.mxu1 %v2370_v0 }
 0x7b3   :  { %1910 = vmatpush3.bf16.msra.mxu1 %v2485_v9 }
 0x7b4   :  { %1911 = vmatprep.subr.bf16.mxu1 %v2370_v0 }
 0x7b7   :  { %1912 = vmatpush3.bf16.msra.mxu1 %v2491_v10 }
 0x7b8   :  { %1913 = vmatprep.subr.bf16.mxu1 %v2370_v0 }
 0x7bb   :  { %1914 = vmatpush3.bf16.msra.mxu1 %v2497_v11 }
 0x85e   :  { %v559_v56 = vpop.f32.mrf.mxu1 }
 0x85f   :  { %v565_v57 = vadd.f32 %v559_v56, %v203_v55 }
 0x860   :  { %v1877_v58 = vpop.f32.mrf.mxu1 }
 0x861   :  { %v566_v59 = vmul.f32 %v565_v57, %v2540_v20  ;;  %v2732_v57 = vld [vmem:[#allocation9 + $0x30] sm:$0xff]   ;;  %v2736_v58 = vld [vmem:[#allocation9 + $0x28] sm:$0xff]  }
 0x862   :  { %v562_v60 = vpop.f32.mrf.mxu1 }
 0x863   :  { %2208 = vtanh.f32 %v566_v59  ;;  %v2740_v59 = vld [vmem:[#allocation9 + $0x20] sm:$0xff]   ;;  %v2744_v60 = vld [vmem:[#allocation9 + $0x18] sm:$0xff]  }
 0x864   :  { %v1878_v61 = vpop.f32.mrf.mxu1 }
 0x865   :  { %v2748_v61 = vld [vmem:[#allocation9 + $0x10] sm:$0xff]  }
 0x870   :  { %v2209_v62 = vpop.eup %2208 }
 0x871   :  { %v568_v4 = vmul.f32 %v2209_v62, %v2540_v20  ;;  %v2752_v62 = vld [vmem:[#allocation9 + $0x8] sm:$0xff]  }
 0x873   :  { %v569_v5 = vadd.f32 %v568_v4, %v2543_v28  ;;  %v2756_v4 = vld [vmem:[#allocation9] sm:$0xff]  }
 0x875   :  { %570 = vrot.lane.b32.xlu0 %v569_v5, %s2366_s14  ;;  %v573_v44 = vmul.f32 %v569_v5, %v517_v51 }
 0x8e7   :  { %v571_v6 = vpop.permute.xlu0 %570 }
 0x8e8   :  { %v572_v13 = vmul.f32 %v571_v6, %v569_v5 }
 0x8ea   :  { %574 = vrot.lane.b32.xlu1 %v572_v13, %s2374_s17 }
 0x95c   :  { %v575_v14 = vpop.permute.xlu1 %574 }
 0x95d   :  { %v576_v17 = vadd.f32 %v575_v14, %v573_v44 }
 0x95f   :  { %2210 = vtanh.f32 %v576_v17 }
 0x96c   :  { %v2211_v18 = vpop.eup %2210 }
 0x96d   :  { %v2683_v19 = vmul.f32 %v2211_v18, %v571_v6 }
 0x96f   :  { %v579_v21 = vpack.c.bf16 %v2683_v19, %v2683_v19 }
 0x971   :  { %1896 = vmatmul.mubr.bf16.vlgmr.msra.gmra.mxu0 %v579_v21 }
 0x972   :  { %1920 = vmatpush3.bf16.msra.mxu0 %v2453_v1  ;;  %1935 = vmatprep.mubr.msk.bf16.mxu0 %vm2371_vm0, %v2370_v0  ;;  %v206_v1 = vadd.f32 %v2537_v16, %v2589_v46 }
 0x973   :  { %1921 = vmatprep.subr.bf16.mxu0 %v2370_v0 }
 0x976   :  { %1922 = vmatpush3.bf16.msra.mxu0 %v2456_v2 }
 0x977   :  { %1923 = vmatprep.subr.bf16.mxu0 %v2370_v0 }
 0x97a   :  { %1924 = vmatpush3.bf16.msra.mxu0 %v2459_v3 }
 0x97b   :  { %1925 = vmatprep.subr.bf16.mxu0 %v2370_v0 }
 0x97e   :  { %1926 = vmatpush3.bf16.msra.mxu0 %v2475_v7 }
 0x97f   :  { %1927 = vmatprep.subr.bf16.mxu0 %v2370_v0 }
 0x982   :  { %1928 = vmatpush3.bf16.msra.mxu0 %v2479_v8 }
 0x983   :  { %1929 = vmatprep.subr.bf16.mxu0 %v2370_v0 }
 0x986   :  { %1930 = vmatpush3.bf16.msra.mxu0 %v2485_v9 }
 0x987   :  { %1931 = vmatprep.subr.bf16.mxu0 %v2370_v0 }
 0x98a   :  { %1932 = vmatpush3.bf16.msra.mxu0 %v2491_v10 }
 0x98b   :  { %1933 = vmatprep.subr.bf16.mxu0 %v2370_v0 }
 0x98e   :  { %1934 = vmatpush3.bf16.msra.mxu0 %v2497_v11  ;;  %v2168_v11 = vld [vmem:[#allocation7 + $0x38] sm:$0xff]  }
 0x98f   :  { %1963 = vmatprep.subr.bf16.mxu0 %v2370_v0  ;;  %1939 = vmatprep.subr.bf16.mxu1 %v2168_v11 }
 0xa31   :  { %v618_v2 = vpop.f32.mrf.mxu0 }
 0xa32   :  { %v624_v3 = vadd.f32 %v618_v2, %v206_v1 }
 0xa33   :  { %v1897_v7 = vpop.f32.mrf.mxu0 }
 0xa34   :  { %v625_v8 = vmul.f32 %v624_v3, %v2540_v20 }
 0xa35   :  { %v621_v22 = vpop.f32.mrf.mxu0 }
 0xa36   :  { %2212 = vtanh.f32 %v625_v8 }
 0xa37   :  { %v1898_v9 = vpop.f32.mrf.mxu0 }
 0xa43   :  { %v2213_v23 = vpop.eup %2212 }
 0xa44   :  { %v627_v10 = vmul.f32 %v2213_v23, %v2540_v20 }
 0xa46   :  { %v628_v24 = vadd.f32 %v627_v10, %v2543_v28 }
 0xa48   :  { %629 = vrot.lane.b32.xlu0 %v628_v24, %s2366_s14  ;;  %v632_v46 = vmul.f32 %v628_v24, %v576_v17 }
 0xaba   :  { %v630_v25 = vpop.permute.xlu0 %629 }
 0xabb   :  { %v631_v15 = vmul.f32 %v630_v25, %v628_v24 }
 0xabd   :  { %633 = vrot.lane.b32.xlu1 %v631_v15, %s2374_s17 }
 0xb2f   :  { %v634_v26 = vpop.permute.xlu1 %633 }
 0xb30   :  { %v2712_v27 = vadd.f32 %v634_v26, %v632_v46 }
 0xb32   :  { %2214 = vtanh.f32 %v2712_v27 }
 0xb3f   :  { %v2215_v29 = vpop.eup %2214 }
 0xb40   :  { %v637_v31 = vmul.f32 %v2215_v29, %v630_v25 }
 0xb42   :  { %v638_v32 = vpack.c.bf16 %v637_v31, %v637_v31  ;;  %v768_v42 = vpack.c.bf16 %v637_v31, %v2683_v19 }
 0xb44   :  { %1916 = vmatmul.mubr.bf16.vlgmr.msra.gmra.mxu1 %v638_v32 }
 0xb45   :  { %1940 = vmatpush3.bf16.msra.mxu1 %v2168_v11  ;;  %1955 = vmatprep.mubr.bf16.mxu1 %v766_v34 }
 0xb46   :  { %1941 = vmatprep.subr.bf16.mxu1 %v2169_v33 }
 0xb49   :  { %1942 = vmatpush3.bf16.msra.mxu1 %v2169_v33 }
 0xb4a   :  { %1943 = vmatprep.subr.bf16.mxu1 %v2170_v35 }
 0xb4d   :  { %1944 = vmatpush3.bf16.msra.mxu1 %v2170_v35 }
 0xb4e   :  { %1945 = vmatprep.subr.bf16.mxu1 %v2171_v36 }
 0xb51   :  { %1946 = vmatpush3.bf16.msra.mxu1 %v2171_v36 }
 0xb52   :  { %1947 = vmatprep.subr.bf16.mxu1 %v2172_v37 }
 0xb55   :  { %1948 = vmatpush3.bf16.msra.mxu1 %v2172_v37 }
 0xb56   :  { %1949 = vmatprep.subr.bf16.mxu1 %v2173_v38 }
 0xb59   :  { %1950 = vmatpush3.bf16.msra.mxu1 %v2173_v38 }
 0xb5a   :  { %1951 = vmatprep.subr.bf16.mxu1 %v2174_v40 }
 0xb5d   :  { %1952 = vmatpush3.bf16.msra.mxu1 %v2174_v40 }
 0xb5e   :  { %1953 = vmatprep.subr.bf16.mxu1 %v2175_v39 }
 0xb61   :  { %1954 = vmatpush3.bf16.msra.mxu1 %v2175_v39 }
 0xb62   :  { %1983 = vmatprep.subr.bf16.mxu1 %v2370_v0 }
 0xb64   :  { %1956 = vmatmul.mubr.bf16.vlgmr.msra.gmra.mxu1 %v767_v63 }
 0xb65   :  { %1959 = vmatprep.mubr.bf16.mxu1 %v768_v42  ;;  %1984 = vmatpush3.bf16.msra.mxu1 %v2728_v43 }
 0xb66   :  { %1985 = vmatprep.subr.bf16.mxu1 %v2370_v0 }
 0xb69   :  { %1986 = vmatpush3.bf16.msra.mxu1 %v2732_v57 }
 0xb6a   :  { %1987 = vmatprep.subr.bf16.mxu1 %v2370_v0 }
 0xb6d   :  { %1988 = vmatpush3.bf16.msra.mxu1 %v2736_v58 }
 0xb6e   :  { %1989 = vmatprep.subr.bf16.mxu1 %v2370_v0 }
 0xb71   :  { %1990 = vmatpush3.bf16.msra.mxu1 %v2740_v59 }
 0xb72   :  { %1991 = vmatprep.subr.bf16.mxu1 %v2370_v0 }
 0xb75   :  { %1992 = vmatpush3.bf16.msra.mxu1 %v2744_v60 }
 0xb76   :  { %1993 = vmatprep.subr.bf16.mxu1 %v2370_v0 }
 0xb79   :  { %1994 = vmatpush3.bf16.msra.mxu1 %v2748_v61 }
 0xb7a   :  { %1995 = vmatprep.subr.bf16.mxu1 %v2370_v0 }
 0xb7d   :  { %1996 = vmatpush3.bf16.msra.mxu1 %v2752_v62 }
 0xb7e   :  { %1997 = vmatprep.subr.bf16.mxu1 %v2370_v0 }
 0xb81   :  { %1998 = vmatpush3.bf16.msra.mxu1 %v2756_v4 }
 0xb82   :  { %2023 = vmatprep.subr.bf16.mxu1 %v2370_v0 }
 0xc04   :  { %v677_v48 = vpop.f32.mrf.mxu1 }
 0xc05   :  { %v683_v49 = vadd.f32 %v677_v48, %v211_v47 }
 0xc06   :  { %v1917_v41 = vpop.f32.mrf.mxu1 }
 0xc07   :  { %v684_v50 = vmul.f32 %v683_v49, %v2540_v20 }
 0xc08   :  { %v680_v51 = vpop.f32.mrf.mxu1 }
 0xc09   :  { %2216 = vtanh.f32 %v684_v50 }
 0xc0a   :  { %v1918_v52 = vpop.f32.mrf.mxu1 }
 0xc16   :  { %v2217_v54 = vpop.eup %2216 }
 0xc17   :  { %v686_v30 = vmul.f32 %v2217_v54, %v2540_v20 }
 0xc19   :  { %v687_v53 = vadd.f32 %v686_v30, %v2543_v28 }
 0xc1b   :  { %688 = vrot.lane.b32.xlu0 %v687_v53, %s2366_s14  ;;  %v691_v5 = vmul.f32 %v687_v53, %v2712_v27 }
 0xc24   :  { %v2811_v9 = vpop.f32.mrf.mxu1 }
 0xc26   :  { %v875_v23 = vpop.f32.mrf.mxu1 }
 0xc28   :  { %v2847_v50 = vpop.f32.mrf.mxu1 }
 0xc2a   :  { %v878_v51 = vpop.f32.mrf.mxu1 }
 0xc8d   :  { %v689_v55 = vpop.permute.xlu0 %688 }
 0xc8e   :  { %v690_v56 = vmul.f32 %v689_v55, %v687_v53 }
 0xc90   :  { %692 = vrot.lane.b32.xlu1 %v690_v56, %s2374_s17 }
 0xd02   :  { %v693_v6 = vpop.permute.xlu1 %692 }
 0xd03   :  { %v2761_v13 = vadd.f32 %v693_v6, %v691_v5 }
 0xd05   :  { %2218 = vtanh.f32 %v2761_v13 }
 0xd12   :  { %v2219_v44 = vpop.eup %2218 }
 0xd13   :  { %v2764_v14 = vmul.f32 %v2219_v44, %v689_v55 }
 0xd15   :  { %v697_v17 = vpack.c.bf16 %v2764_v14, %v2764_v14 }
 0xd17   :  { %1936 = vmatmul.mubr.bf16.vlgmr.msra.gmra.mxu0 %v697_v17 }
 0xd18   :  { %1964 = vmatpush3.bf16.msra.mxu0 %v2728_v43  ;;  %1979 = vmatprep.mubr.msk.bf16.mxu0 %vm2371_vm0, %v2370_v0 }
 0xd19   :  { %1965 = vmatprep.subr.bf16.mxu0 %v2370_v0 }
 0xd1c   :  { %1966 = vmatpush3.bf16.msra.mxu0 %v2732_v57 }
 0xd1d   :  { %1967 = vmatprep.subr.bf16.mxu0 %v2370_v0 }
 0xd20   :  { %1968 = vmatpush3.bf16.msra.mxu0 %v2736_v58 }
 0xd21   :  { %1969 = vmatprep.subr.bf16.mxu0 %v2370_v0 }
 0xd24   :  { %1970 = vmatpush3.bf16.msra.mxu0 %v2740_v59 }
 0xd25   :  { %1971 = vmatprep.subr.bf16.mxu0 %v2370_v0 }
 0xd28   :  { %1972 = vmatpush3.bf16.msra.mxu0 %v2744_v60 }
 0xd29   :  { %1973 = vmatprep.subr.bf16.mxu0 %v2370_v0 }
 0xd2c   :  { %1974 = vmatpush3.bf16.msra.mxu0 %v2748_v61 }
 0xd2d   :  { %1975 = vmatprep.subr.bf16.mxu0 %v2370_v0 }
 0xd30   :  { %1976 = vmatpush3.bf16.msra.mxu0 %v2752_v62 }
 0xd31   :  { %1977 = vmatprep.subr.bf16.mxu0 %v2370_v0 }
 0xd34   :  { %1978 = vmatpush3.bf16.msra.mxu0 %v2756_v4 }
 0xd35   :  { %2003 = vmatprep.subr.bf16.mxu0 %v2370_v0 }
 0xd37   :  { %1980 = vmatmul.mubr.bf16.vlgmr.msra.gmra.mxu0 %v2372_v12  ;;  %v214_v12 = vadd.f32 %v2587_v45, %v2537_v16  ;;  %v2816_v16 = vld [vmem:[%s2997_s6] ss:$0 sm:$0xff] }
 0xd38   :  { %2004 = vmatpush3.bf16.msra.mxu0 %v2728_v43  ;;  %2019 = vmatprep.mubr.msk.bf16.mxu0 %vm2371_vm0, %v2370_v0  ;;  %v876_v45 = vadd.f32 %v2816_v16, %v875_v23  ;;  %v879_v55 = vadd.f32 %v2816_v16, %v878_v51  ;;  %v884_v23 = vadd.f32 %v2811_v9, %v2816_v16 }
 0xd39   :  { %2005 = vmatprep.subr.bf16.mxu0 %v2370_v0 }
 0xd3c   :  { %2006 = vmatpush3.bf16.msra.mxu0 %v2732_v57 }
 0xd3d   :  { %2007 = vmatprep.subr.bf16.mxu0 %v2370_v0 }
 0xd40   :  { %2008 = vmatpush3.bf16.msra.mxu0 %v2736_v58 }
 0xd41   :  { %2009 = vmatprep.subr.bf16.mxu0 %v2370_v0 }
 0xd44   :  { %2010 = vmatpush3.bf16.msra.mxu0 %v2740_v59 }
 0xd45   :  { %2011 = vmatprep.subr.bf16.mxu0 %v2370_v0 }
 0xd48   :  { %2012 = vmatpush3.bf16.msra.mxu0 %v2744_v60 }
 0xd49   :  { %2013 = vmatprep.subr.bf16.mxu0 %v2370_v0 }
 0xd4c   :  { %2014 = vmatpush3.bf16.msra.mxu0 %v2748_v61 }
 0xd4d   :  { %2015 = vmatprep.subr.bf16.mxu0 %v2370_v0 }
 0xd50   :  { %2016 = vmatpush3.bf16.msra.mxu0 %v2752_v62 }
 0xd51   :  { %2017 = vmatprep.subr.bf16.mxu0 %v2370_v0 }
 0xd54   :  { %2018 = vmatpush3.bf16.msra.mxu0 %v2756_v4 }
 0xd55   :  { %2043 = vmatprep.subr.bf16.mxu0 %v2370_v0 }
 0xdd7   :  { %v736_v18 = vpop.f32.mrf.mxu0 }
 0xdd8   :  { %v742_v19 = vadd.f32 %v736_v18, %v214_v12 }
 0xdd9   :  { %v1937_v21 = vpop.f32.mrf.mxu0 }
 0xdda   :  { %v743_v1 = vmul.f32 %v742_v19, %v2540_v20 }
 0xddb   :  { %v739_v2 = vpop.f32.mrf.mxu0 }
 0xddc   :  { %2220 = vtanh.f32 %v743_v1 }
 0xddd   :  { %v1938_v3 = vpop.f32.mrf.mxu0 }
 0xde9   :  { %v2221_v7 = vpop.eup %2220 }
 0xdea   :  { %v745_v8 = vmul.f32 %v2221_v7, %v2540_v20 }
 0xdec   :  { %v746_v22 = vadd.f32 %v745_v8, %v2543_v28 }
 0xdee   :  { %747 = vrot.lane.b32.xlu0 %v746_v22, %s2366_s14  ;;  %v750_v35 = vmul.f32 %v746_v22, %v2761_v13 }
 0xdf7   :  { %v1013_v10 = vpop.f32.mrf.mxu0 }
 0xdf8   :  { %v1019_v24 = vadd.f32 %v1013_v10, %v876_v45 }
 0xdf9   :  { %v1981_v11 = vpop.f32.mrf.mxu0 }
 0xdfa   :  { %v1020_v25 = vmul.f32 %v1019_v24, %v2540_v20 }
 0xdfb   :  { %v1016_v15 = vpop.f32.mrf.mxu0 }
 0xdfc   :  { %2222 = vtanh.f32 %v1020_v25 }
 0xdfd   :  { %v1982_v46 = vpop.f32.mrf.mxu0 }
 0xe09   :  { %v2223_v26 = vpop.eup %2222 }
 0xe0a   :  { %v1022_v27 = vmul.f32 %v2223_v26, %v2540_v20 }
 0xe0c   :  { %v1023_v29 = vadd.f32 %v1022_v27, %v2543_v28 }
 0xe0e   :  { %1024 = vrot.lane.b32.xlu1 %v1023_v29, %s2366_s14  ;;  %v1027_v63 = vmul.f32 0.0, %v1023_v29 }
 0xe60   :  { %v748_v31 = vpop.permute.xlu0 %747 }
 0xe61   :  { %v749_v32 = vmul.f32 %v748_v31, %v746_v22 }
 0xe63   :  { %751 = vrot.lane.b32.xlu0 %v749_v32, %s2374_s17 }
 0xe80   :  { %v1025_v33 = vpop.permute.xlu1 %1024 }
 0xe81   :  { %v1026_v34 = vmul.f32 %v1025_v33, %v1023_v29 }
 0xe83   :  { %1028 = vrot.lane.b32.xlu1 %v1026_v34, %s2374_s17 }
 0xed5   :  { %v752_v36 = vpop.permute.xlu0 %751 }
 0xed6   :  { %v753_v37 = vadd.f32 %v752_v36, %v750_v35 }
 0xed8   :  { %2224 = vtanh.f32 %v753_v37  ;;  %v887_v37 = vadd.f32 %v2847_v50, %v2816_v16 }
 0xee5   :  { %v2225_v38 = vpop.eup %2224 }
 0xee6   :  { %v755_v40 = vmul.f32 %v2225_v38, %v748_v31 }
 0xee8   :  { %v769_v39 = vpack.c.bf16 %v755_v40, %v2764_v14 }
 0xeea   :  { %1960 = vmatmul.mubr.bf16.gmra.mxu1 %v769_v39 }
 0xeeb   :  { %1999 = vmatprep.mubr.msk.bf16.mxu1 %vm2371_vm0, %v2370_v0 }
 0xef5   :  { %v1029_v42 = vpop.permute.xlu1 %1028 }
 0xef6   :  { %v1030_v47 = vadd.f32 %v1029_v42, %v1027_v63 }
 0xef8   :  { %2226 = vtanh.f32 %v1030_v47 }
 0xf05   :  { %v2227_v48 = vpop.eup %2226 }
 0xf06   :  { %v1032_v49 = vmul.f32 %v2227_v48, %v1025_v33 }
 0xf08   :  { %v1033_v41 = vpack.c.bf16 %v1032_v49, %v1032_v49 }
 0xf0a   :  { %2000 = vmatmul.mubr.bf16.vlgmr.msra.gmra.mxu1 %v1033_v41 }
 0xf0b   :  { %2024 = vmatpush3.bf16.msra.mxu1 %v2728_v43  ;;  %2039 = vmatprep.mubr.msk.bf16.mxu1 %vm2371_vm0, %v2370_v0 }
 0xf0c   :  { %2025 = vmatprep.subr.bf16.mxu1 %v2370_v0 }
 0xf0f   :  { %2026 = vmatpush3.bf16.msra.mxu1 %v2732_v57 }
 0xf10   :  { %2027 = vmatprep.subr.bf16.mxu1 %v2370_v0 }
 0xf13   :  { %2028 = vmatpush3.bf16.msra.mxu1 %v2736_v58 }
 0xf14   :  { %2029 = vmatprep.subr.bf16.mxu1 %v2370_v0 }
 0xf17   :  { %2030 = vmatpush3.bf16.msra.mxu1 %v2740_v59 }
 0xf18   :  { %2031 = vmatprep.subr.bf16.mxu1 %v2370_v0 }
 0xf1b   :  { %2032 = vmatpush3.bf16.msra.mxu1 %v2744_v60 }
 0xf1c   :  { %2033 = vmatprep.subr.bf16.mxu1 %v2370_v0 }
 0xf1f   :  { %2034 = vmatpush3.bf16.msra.mxu1 %v2748_v61 }
 0xf20   :  { %2035 = vmatprep.subr.bf16.mxu1 %v2370_v0 }
 0xf23   :  { %2036 = vmatpush3.bf16.msra.mxu1 %v2752_v62 }
 0xf24   :  { %2037 = vmatprep.subr.bf16.mxu1 %v2370_v0 }
 0xf27   :  { %2038 = vmatpush3.bf16.msra.mxu1 %v2756_v4 }
 0xf28   :  { %2063 = vmatprep.subr.bf16.mxu1 %v2370_v0 }
 0xfaa   :  { %v2849_v52 = vpop.f32.mrf.mxu1 }
 0xfac   :  { %v2851_v54 = vpop.f32.mrf.mxu1 }
 0xfae   :  { %v2853_v30 = vpop.f32.mrf.mxu1 }
 0xfb0   :  { %v2855_v53 = vpop.f32.mrf.mxu1 }
 0xfca   :  { %v1069_v56 = vpop.f32.mrf.mxu1 }
 0xfcb   :  { %v1075_v5 = vadd.f32 %v1069_v56, %v879_v55 }
 0xfcc   :  { %v2001_v6 = vpop.f32.mrf.mxu1 }
 0xfcd   :  { %v1076_v13 = vmul.f32 %v1075_v5, %v2540_v20 }
 0xfce   :  { %v1072_v44 = vpop.f32.mrf.mxu1 }
 0xfcf   :  { %2228 = vtanh.f32 %v1076_v13 }
 0xfd0   :  { %v2002_v14 = vpop.f32.mrf.mxu1 }
 0xfd1   :  { %v892_v14 = vadd.f32 %v2816_v16, %v2851_v54 }
 0xfdc   :  { %v2229_v17 = vpop.eup %2228 }
 0xfdd   :  { %v1078_v12 = vmul.f32 %v2229_v17, %v2540_v20 }
 0xfdf   :  { %v1079_v18 = vadd.f32 %v1078_v12, %v2543_v28 }
 0xfe1   :  { %1080 = vrot.lane.b32.xlu0 %v1079_v18, %s2366_s14  ;;  %v1083_v1 = vmul.f32 %v1079_v18, %v1030_v47 }
0x1053   :  { %v1081_v19 = vpop.permute.xlu0 %1080 }
0x1054   :  { %v1082_v21 = vmul.f32 %v1081_v19, %v1079_v18 }
0x1056   :  { %1084 = vrot.lane.b32.xlu1 %v1082_v21, %s2374_s17 }
0x10c8   :  { %v1085_v2 = vpop.permute.xlu1 %1084 }
0x10c9   :  { %v1086_v3 = vadd.f32 %v1085_v2, %v1083_v1 }
0x10cb   :  { %2230 = vtanh.f32 %v1086_v3 }
0x10d8   :  { %v2231_v7 = vpop.eup %2230 }
0x10d9   :  { %v1088_v8 = vmul.f32 %v2231_v7, %v1081_v19 }
0x10db   :  { %v1089_v22 = vpack.c.bf16 %v1088_v8, %v1088_v8 }
0x10dd   :  { %2020 = vmatmul.mubr.bf16.vlgmr.msra.gmra.mxu0 %v1089_v22 }
0x10de   :  { %2044 = vmatpush3.bf16.msra.mxu0 %v2728_v43  ;;  %2059 = vmatprep.mubr.msk.bf16.mxu0 %vm2371_vm0, %v2370_v0 }
0x10df   :  { %2045 = vmatprep.subr.bf16.mxu0 %v2370_v0 }
0x10e2   :  { %2046 = vmatpush3.bf16.msra.mxu0 %v2732_v57 }
0x10e3   :  { %2047 = vmatprep.subr.bf16.mxu0 %v2370_v0 }
0x10e6   :  { %2048 = vmatpush3.bf16.msra.mxu0 %v2736_v58 }
0x10e7   :  { %2049 = vmatprep.subr.bf16.mxu0 %v2370_v0 }
0x10ea   :  { %2050 = vmatpush3.bf16.msra.mxu0 %v2740_v59 }
0x10eb   :  { %2051 = vmatprep.subr.bf16.mxu0 %v2370_v0 }
0x10ee   :  { %2052 = vmatpush3.bf16.msra.mxu0 %v2744_v60 }
0x10ef   :  { %2053 = vmatprep.subr.bf16.mxu0 %v2370_v0 }
0x10f2   :  { %2054 = vmatpush3.bf16.msra.mxu0 %v2748_v61 }
0x10f3   :  { %2055 = vmatprep.subr.bf16.mxu0 %v2370_v0 }
0x10f6   :  { %2056 = vmatpush3.bf16.msra.mxu0 %v2752_v62 }
0x10f7   :  { %2057 = vmatprep.subr.bf16.mxu0 %v2370_v0 }
0x10fa   :  { %2058 = vmatpush3.bf16.msra.mxu0 %v2756_v4 }
0x10fb   :  { %2083 = vmatprep.subr.bf16.mxu0 %v2370_v0 }
0x119d   :  { %v1125_v45 = vpop.f32.mrf.mxu0 }
0x119e   :  { %v1131_v10 = vadd.f32 %v1125_v45, %v884_v23 }
0x119f   :  { %v2021_v24 = vpop.f32.mrf.mxu0 }
0x11a0   :  { %v1132_v11 = vmul.f32 %v1131_v10, %v2540_v20 }
0x11a1   :  { %v1128_v25 = vpop.f32.mrf.mxu0 }
0x11a2   :  { %2232 = vtanh.f32 %v1132_v11 }
0x11a3   :  { %v2022_v15 = vpop.f32.mrf.mxu0 }
0x11af   :  { %v2233_v46 = vpop.eup %2232 }
0x11b0   :  { %v1134_v26 = vmul.f32 %v2233_v46, %v2540_v20 }
0x11b2   :  { %v1135_v27 = vadd.f32 %v1134_v26, %v2543_v28 }
0x11b4   :  { %1136 = vrot.lane.b32.xlu0 %v1135_v27, %s2366_s14  ;;  %v1139_v9 = vmul.f32 %v1135_v27, %v1086_v3 }
0x1226   :  { %v1137_v29 = vpop.permute.xlu0 %1136 }
0x1227   :  { %v1138_v31 = vmul.f32 %v1137_v29, %v1135_v27 }
0x1229   :  { %1140 = vrot.lane.b32.xlu1 %v1138_v31, %s2374_s17 }
0x129b   :  { %v1141_v32 = vpop.permute.xlu1 %1140 }
0x129c   :  { %v1142_v33 = vadd.f32 %v1141_v32, %v1139_v9 }
0x129e   :  { %2234 = vtanh.f32 %v1142_v33 }
0x12ab   :  { %v2235_v34 = vpop.eup %2234 }
0x12ac   :  { %v1144_v35 = vmul.f32 %v2235_v34, %v1137_v29 }
0x12ae   :  { %v1145_v36 = vpack.c.bf16 %v1144_v35, %v1144_v35 }
0x12b0   :  { %2040 = vmatmul.mubr.bf16.vlgmr.msra.gmra.mxu1 %v1145_v36 }
0x12b1   :  { %2064 = vmatpush3.bf16.msra.mxu1 %v2728_v43  ;;  %2079 = vmatprep.mubr.msk.bf16.mxu1 %vm2371_vm0, %v2370_v0 }
0x12b2   :  { %2065 = vmatprep.subr.bf16.mxu1 %v2370_v0 }
0x12b5   :  { %2066 = vmatpush3.bf16.msra.mxu1 %v2732_v57 }
0x12b6   :  { %2067 = vmatprep.subr.bf16.mxu1 %v2370_v0 }
0x12b9   :  { %2068 = vmatpush3.bf16.msra.mxu1 %v2736_v58 }
0x12ba   :  { %2069 = vmatprep.subr.bf16.mxu1 %v2370_v0 }
0x12bd   :  { %2070 = vmatpush3.bf16.msra.mxu1 %v2740_v59 }
0x12be   :  { %2071 = vmatprep.subr.bf16.mxu1 %v2370_v0 }
0x12c1   :  { %2072 = vmatpush3.bf16.msra.mxu1 %v2744_v60 }
0x12c2   :  { %2073 = vmatprep.subr.bf16.mxu1 %v2370_v0 }
0x12c5   :  { %2074 = vmatpush3.bf16.msra.mxu1 %v2748_v61 }
0x12c6   :  { %2075 = vmatprep.subr.bf16.mxu1 %v2370_v0 }
0x12c9   :  { %2076 = vmatpush3.bf16.msra.mxu1 %v2752_v62 }
0x12ca   :  { %2077 = vmatprep.subr.bf16.mxu1 %v2370_v0 }
0x12cd   :  { %2078 = vmatpush3.bf16.msra.mxu1 %v2756_v4 }
0x12ce   :  { %2103 = vmatprep.subr.bf16.mxu1 %v2370_v0 }
0x1370   :  { %v1181_v38 = vpop.f32.mrf.mxu1 }
0x1371   :  { %v1187_v40 = vadd.f32 %v1181_v38, %v887_v37 }
0x1372   :  { %v2041_v39 = vpop.f32.mrf.mxu1 }
0x1373   :  { %v1188_v63 = vmul.f32 %v1187_v40, %v2540_v20 }
0x1374   :  { %v1184_v42 = vpop.f32.mrf.mxu1 }
0x1375   :  { %2236 = vtanh.f32 %v1188_v63 }
0x1376   :  { %v2042_v47 = vpop.f32.mrf.mxu1 }
0x1382   :  { %v2237_v48 = vpop.eup %2236 }
0x1383   :  { %v1190_v49 = vmul.f32 %v2237_v48, %v2540_v20 }
0x1385   :  { %v1191_v41 = vadd.f32 %v1190_v49, %v2543_v28 }
0x1387   :  { %1192 = vrot.lane.b32.xlu0 %v1191_v41, %s2366_s14  ;;  %v1195_v50 = vmul.f32 %v1191_v41, %v1142_v33  ;;  %v900_v33 = vadd.f32 %v2849_v52, %v2816_v16 }
0x13f9   :  { %v1193_v51 = vpop.permute.xlu0 %1192 }
0x13fa   :  { %v1194_v55 = vmul.f32 %v1193_v51, %v1191_v41 }
0x13fc   :  { %1196 = vrot.lane.b32.xlu1 %v1194_v55, %s2374_s17 }
0x146e   :  { %v1197_v56 = vpop.permute.xlu1 %1196 }
0x146f   :  { %v1198_v5 = vadd.f32 %v1197_v56, %v1195_v50  ;;  %v903_v56 = vadd.f32 %v2853_v30, %v2816_v16  ;;  %v2187_v30 = vld [vmem:[#allocation10 + $0x20] sm:$0xff]  }
0x1471   :  { %2238 = vtanh.f32 %v1198_v5 }
0x147e   :  { %v2239_v6 = vpop.eup %2238 }
0x147f   :  { %v1200_v13 = vmul.f32 %v2239_v6, %v1193_v51 }
0x1481   :  { %v1201_v44 = vpack.c.bf16 %v1200_v13, %v1200_v13 }
0x1483   :  { %2060 = vmatmul.mubr.bf16.vlgmr.msra.gmra.mxu0 %v1201_v44 }
0x1484   :  { %2084 = vmatpush3.bf16.msra.mxu0 %v2728_v43  ;;  %2099 = vmatprep.mubr.msk.bf16.mxu0 %vm2371_vm0, %v2370_v0 }
0x1485   :  { %2085 = vmatprep.subr.bf16.mxu0 %v2370_v0 }
0x1488   :  { %2086 = vmatpush3.bf16.msra.mxu0 %v2732_v57 }
0x1489   :  { %2087 = vmatprep.subr.bf16.mxu0 %v2370_v0 }
0x148c   :  { %2088 = vmatpush3.bf16.msra.mxu0 %v2736_v58 }
0x148d   :  { %2089 = vmatprep.subr.bf16.mxu0 %v2370_v0 }
0x1490   :  { %2090 = vmatpush3.bf16.msra.mxu0 %v2740_v59 }
0x1491   :  { %2091 = vmatprep.subr.bf16.mxu0 %v2370_v0 }
0x1494   :  { %2092 = vmatpush3.bf16.msra.mxu0 %v2744_v60 }
0x1495   :  { %2093 = vmatprep.subr.bf16.mxu0 %v2370_v0 }
0x1498   :  { %2094 = vmatpush3.bf16.msra.mxu0 %v2748_v61 }
0x1499   :  { %2095 = vmatprep.subr.bf16.mxu0 %v2370_v0 }
0x149c   :  { %2096 = vmatpush3.bf16.msra.mxu0 %v2752_v62 }
0x149d   :  { %2097 = vmatprep.subr.bf16.mxu0 %v2370_v0 }
0x14a0   :  { %2098 = vmatpush3.bf16.msra.mxu0 %v2756_v4 }
0x14a1   :  { %2123 = vmatprep.subr.bf16.mxu0 %v2370_v0 }
0x1543   :  { %v1237_v17 = vpop.f32.mrf.mxu0 }
0x1544   :  { %v1243_v12 = vadd.f32 %v1237_v17, %v892_v14 }
0x1545   :  { %v2061_v18 = vpop.f32.mrf.mxu0 }
0x1546   :  { %v1244_v19 = vmul.f32 %v1243_v12, %v2540_v20  ;;  %v2184_v12 = vld [vmem:[#allocation10 + $0x38] sm:$0xff]   ;;  %v2185_v18 = vld [vmem:[#allocation10 + $0x30] sm:$0xff]  }
0x1547   :  { %v1240_v21 = vpop.f32.mrf.mxu0 }
0x1548   :  { %2240 = vtanh.f32 %v1244_v19  ;;  %v2186_v21 = vld [vmem:[#allocation10 + $0x28] sm:$0xff]  }
0x1549   :  { %v2062_v1 = vpop.f32.mrf.mxu0 }
0x1555   :  { %v2241_v2 = vpop.eup %2240 }
0x1556   :  { %v1246_v3 = vmul.f32 %v2241_v2, %v2540_v20  ;;  %v2188_v2 = vld [vmem:[#allocation10 + $0x18] sm:$0xff]  }
0x1558   :  { %v1247_v7 = vadd.f32 %v1246_v3, %v2543_v28  ;;  %v2189_v3 = vld [vmem:[#allocation10 + $0x10] sm:$0xff]  }
0x155a   :  { %1248 = vrot.lane.b32.xlu0 %v1247_v7, %s2366_s14  ;;  %v1251_v54 = vmul.f32 %v1247_v7, %v1198_v5 }
0x15cc   :  { %v1249_v8 = vpop.permute.xlu0 %1248 }
0x15cd   :  { %v1250_v22 = vmul.f32 %v1249_v8, %v1247_v7 }
0x15cf   :  { %1252 = vrot.lane.b32.xlu1 %v1250_v22, %s2374_s17 }
0x1641   :  { %v1253_v23 = vpop.permute.xlu1 %1252 }
0x1642   :  { %v1254_v45 = vadd.f32 %v1253_v23, %v1251_v54 }
0x1644   :  { %2242 = vtanh.f32 %v1254_v45 }
0x1651   :  { %v2243_v10 = vpop.eup %2242 }
0x1652   :  { %v1256_v24 = vmul.f32 %v2243_v10, %v1249_v8  ;;  %v2191_v8 = vld [vmem:[#allocation10] sm:$0xff]  }
0x1654   :  { %v1257_v11 = vpack.c.bf16 %v1256_v24, %v1256_v24 }
0x1656   :  { %2080 = vmatmul.mubr.bf16.vlgmr.msra.gmra.mxu1 %v1257_v11  ;;  %v1590_v11 = vld [vmem:[%s2999_s8] ss:$0 sm:$0xff] }
0x1657   :  { %2104 = vmatpush3.bf16.msra.mxu1 %v2728_v43  ;;  %2119 = vmatprep.mubr.msk.bf16.mxu1 %vm2371_vm0, %v2370_v0  ;;  %v895_v43 = vadd.f32 %v2816_v16, %v2855_v53 }
0x1658   :  { %2105 = vmatprep.subr.bf16.mxu1 %v2370_v0 }
0x165b   :  { %2106 = vmatpush3.bf16.msra.mxu1 %v2732_v57 }
0x165c   :  { %2107 = vmatprep.subr.bf16.mxu1 %v2370_v0 }
0x165f   :  { %2108 = vmatpush3.bf16.msra.mxu1 %v2736_v58 }
0x1660   :  { %2109 = vmatprep.subr.bf16.mxu1 %v2370_v0 }
0x1663   :  { %2110 = vmatpush3.bf16.msra.mxu1 %v2740_v59 }
0x1664   :  { %2111 = vmatprep.subr.bf16.mxu1 %v2370_v0 }
0x1667   :  { %2112 = vmatpush3.bf16.msra.mxu1 %v2744_v60 }
0x1668   :  { %2113 = vmatprep.subr.bf16.mxu1 %v2370_v0 }
0x166b   :  { %2114 = vmatpush3.bf16.msra.mxu1 %v2748_v61 }
0x166c   :  { %2115 = vmatprep.subr.bf16.mxu1 %v2370_v0 }
0x166f   :  { %2116 = vmatpush3.bf16.msra.mxu1 %v2752_v62 }
0x1670   :  { %2117 = vmatprep.subr.bf16.mxu1 %v2370_v0 }
0x1673   :  { %2118 = vmatpush3.bf16.msra.mxu1 %v2756_v4 }
0x1716   :  { %v1293_v57 = vpop.f32.mrf.mxu1 }
0x1717   :  { %v1299_v58 = vadd.f32 %v1293_v57, %v895_v43 }
0x1718   :  { %v2081_v59 = vpop.f32.mrf.mxu1 }
0x1719   :  { %v1300_v60 = vmul.f32 %v1299_v58, %v2540_v20 }
0x171a   :  { %v1296_v25 = vpop.f32.mrf.mxu1 }
0x171b   :  { %2244 = vtanh.f32 %v1300_v60 }
0x171c   :  { %v2082_v15 = vpop.f32.mrf.mxu1 }
0x1728   :  { %v2245_v61 = vpop.eup %2244 }
0x1729   :  { %v1302_v46 = vmul.f32 %v2245_v61, %v2540_v20 }
0x172b   :  { %v1303_v62 = vadd.f32 %v1302_v46, %v2543_v28 }
0x172d   :  { %1304 = vrot.lane.b32.xlu0 %v1303_v62, %s2366_s14  ;;  %v1307_v53 = vmul.f32 %v1303_v62, %v1254_v45 }
0x179f   :  { %v1305_v26 = vpop.permute.xlu0 %1304 }
0x17a0   :  { %v1306_v4 = vmul.f32 %v1305_v26, %v1303_v62 }
0x17a2   :  { %1308 = vrot.lane.b32.xlu1 %v1306_v4, %s2374_s17 }
0x1814   :  { %v1309_v27 = vpop.permute.xlu1 %1308 }
0x1815   :  { %v1310_v29 = vadd.f32 %v1309_v27, %v1307_v53 }
0x1817   :  { %2246 = vtanh.f32 %v1310_v29 }
0x1824   :  { %v2247_v31 = vpop.eup %2246 }
0x1825   :  { %v1312_v9 = vmul.f32 %v2247_v31, %v1305_v26 }
0x1827   :  { %v1313_v32 = vpack.c.bf16 %v1312_v9, %v1312_v9 }
0x1829   :  { %2100 = vmatmul.mubr.bf16.vlgmr.msra.gmra.mxu0 %v1313_v32 }
0x182a   :  { %2139 = vmatprep.mubr.msk.bf16.mxu0 %vm2371_vm0, %v2370_v0  ;;  %2124 = vmatpush3.bf16.msra.mxu0 %v2184_v12 }
0x182b   :  { %2125 = vmatprep.subr.bf16.mxu0 %v2370_v0 }
0x182e   :  { %2126 = vmatpush3.bf16.msra.mxu0 %v2185_v18 }
0x182f   :  { %2127 = vmatprep.subr.bf16.mxu0 %v2370_v0 }
0x1832   :  { %2128 = vmatpush3.bf16.msra.mxu0 %v2186_v21 }
0x1833   :  { %2129 = vmatprep.subr.bf16.mxu0 %v2370_v0 }
0x1836   :  { %2130 = vmatpush3.bf16.msra.mxu0 %v2187_v30 }
0x1837   :  { %2131 = vmatprep.subr.bf16.mxu0 %v2370_v0 }
0x183a   :  { %2132 = vmatpush3.bf16.msra.mxu0 %v2188_v2 }
0x183b   :  { %2133 = vmatprep.subr.bf16.mxu0 %v2370_v0 }
0x183e   :  { %2134 = vmatpush3.bf16.msra.mxu0 %v2189_v3 }
0x183f   :  { %2135 = vmatprep.subr.bf16.mxu0 %v2370_v0 }
0x18e9   :  { %v1349_v34 = vpop.f32.mrf.mxu0 }
0x18ea   :  { %v1355_v35 = vadd.f32 %v1349_v34, %v900_v33 }
0x18eb   :  { %v2101_v36 = vpop.f32.mrf.mxu0 }
0x18ec   :  { %v1356_v37 = vmul.f32 %v1355_v35, %v2540_v20 }
0x18ed   :  { %v1352_v38 = vpop.f32.mrf.mxu0 }
0x18ee   :  { %2248 = vtanh.f32 %v1356_v37 }
0x18ef   :  { %v2102_v40 = vpop.f32.mrf.mxu0 }
0x18fb   :  { %v2249_v39 = vpop.eup %2248 }
0x18fc   :  { %v1358_v63 = vmul.f32 %v2249_v39, %v2540_v20 }
0x18fe   :  { %v1359_v42 = vadd.f32 %v1358_v63, %v2543_v28 }
0x1900   :  { %1360 = vrot.lane.b32.xlu0 %v1359_v42, %s2366_s14  ;;  %v1363_v52 = vmul.f32 %v1359_v42, %v1310_v29 }
0x1972   :  { %v1361_v47 = vpop.permute.xlu0 %1360 }
0x1973   :  { %v1362_v48 = vmul.f32 %v1361_v47, %v1359_v42 }
0x1975   :  { %1364 = vrot.lane.b32.xlu1 %v1362_v48, %s2374_s17 }
0x19e7   :  { %v1365_v49 = vpop.permute.xlu1 %1364 }
0x19e8   :  { %v1366_v41 = vadd.f32 %v1365_v49, %v1363_v52 }
0x19ea   :  { %2250 = vtanh.f32 %v1366_v41 }
0x19f7   :  { %v2251_v51 = vpop.eup %2250 }
0x19f8   :  { %v1368_v55 = vmul.f32 %v2251_v51, %v1361_v47 }
0x19fa   :  { %v1369_v50 = vpack.c.bf16 %v1368_v55, %v1368_v55 }
0x19fc   :  { %2120 = vmatmul.mubr.bf16.vlgmr.msra.gmra.mxu1 %v1369_v50 }
0x1abc   :  { %v1405_v5 = vpop.f32.mrf.mxu1 }
0x1abd   :  { %v1411_v6 = vadd.f32 %v1405_v5, %v903_v56 }
0x1abe   :  { %v2121_v13 = vpop.f32.mrf.mxu1 }
0x1abf   :  { %v1412_v44 = vmul.f32 %v1411_v6, %v2540_v20 }
0x1ac0   :  { %v1408_v14 = vpop.f32.mrf.mxu1 }
0x1ac1   :  { %2252 = vtanh.f32 %v1412_v44 }
0x1ac2   :  { %v2122_v17 = vpop.f32.mrf.mxu1 }
0x1ace   :  { %v2253_v19 = vpop.eup %2252 }
0x1acf   :  { %v1414_v1 = vmul.f32 %v2253_v19, %v2540_v20  ;;  %v2190_v20 = vld [vmem:[#allocation10 + $0x8] sm:$0xff]  }
0x1ad0   :  { %2136 = vmatpush3.bf16.msra.mxu0 %v2190_v20 }
0x1ad1   :  { %v1415_v16 = vadd.f32 %v1414_v1, %v2543_v28  ;;  %2137 = vmatprep.subr.bf16.mxu0 %v2370_v0 }
0x1ad3   :  { %1416 = vrot.lane.b32.xlu0 %v1415_v16, %s2366_s14  ;;  %v1419_v22 = vmul.f32 %v1415_v16, %v1366_v41 }
0x1ad4   :  { %2138 = vmatpush3.bf16.msra.mxu0 %v2191_v8 }
0x1b45   :  { %v1417_v7 = vpop.permute.xlu0 %1416 }
0x1b46   :  { %v1418_v28 = vmul.f32 %v1417_v7, %v1415_v16 }
0x1b48   :  { %1420 = vrot.lane.b32.xlu1 %v1418_v28, %s2374_s17 }
0x1bba   :  { %v1421_v54 = vpop.permute.xlu1 %1420 }
0x1bbb   :  { %v1422_v23 = vadd.f32 %v1421_v54, %v1419_v22 }
0x1bbd   :  { %2254 = vtanh.f32 %v1422_v23 }
0x1bca   :  { %v2255_v45 = vpop.eup %2254 }
0x1bcb   :  { %v1424_v10 = vmul.f32 %v2255_v45, %v1417_v7 }
0x1bcd   :  { %v1425_v24 = vpack.c.bf16 %v1424_v10, %v1424_v10 }
0x1bcf   :  { %2140 = vmatmul.mubr.bf16.vlgmr.msra.gmra.mxu0 %v1425_v24 }
0x1c8f   :  { %v1531_v43 = vpop.f32.mrf.mxu0 }
0x1c90   :  { %v1532_v57 = vadd.f32 %v1590_v11, %v1531_v43 }
0x1c91   :  { %v2141_v58 = vpop.f32.mrf.mxu0 }
0x1c92   :  { %1537 = vst [vmem:[#allocation12] sm:$0xff] %v1532_v57 }
0x1c93   :  { %v1534_v0 = vpop.f32.mrf.mxu0 }
0x1c94   :  { %2347 = shalt.err (!%p2344_p10)
}
0x1c95   :  { %1547 = dma.vmem_to_hbm [thread:$0]  %s1545_s20, 128, %s3000_s9, [#allocation6]   ;;  %v2142_v59 = vpop.f32.mrf.mxu0 }
0x1c96   :  { %2362 = dma.done.wait [#allocation6], 128  }
0x1c97   :  { %2363 = vsyncadd [#allocation6], 4294967168 }
0x1c98   :  { %1551 = vsyncpa [#allocation5], 1 }
0x1c99   :  { %1552 = vsyncpa [#allocation8], 1 }
0x1c9a   :  { %1553 = vsyncpa [#allocation11], 1 }
0x1c9b   :  { %1554 = vsyncpa [#allocation6], 1 }

</bundles_post_ra>
